<compile_context>
chip_gen: v5e
topology: v5e:2x2
jax: 0.10.0
libtpu: 0.0.40
codegen_flags: <defaults>
</compile_context>

<pallas_src>
import functools

import jax
import jax.numpy as jnp
from jax.experimental import pallas as pl
from jax.experimental.pallas import tpu as pltpu


DIM_INPUT = 8
MODE_DIMS = (54, 4)                      # {0: 54, 1: 4}
N_OUTS = MODE_DIMS[0] * MODE_DIMS[1]     # 216
LANE = 128


def _round_up(x, m):
    return (x + m - 1) // m * m


def _output_kernel(x_ref, w_ref, b_ref, o_ref):
    """One batch tile of the 216-way independent Linear(8, 1) bank.

    x_ref: (Bt, N*D)    flat activations, lane-dense (natural layout of x)
    w_ref: (N*D, Npad)  block-diagonal expanded weights; column n rows
                        n*D..n*D+D-1 hold W[n, :], everything else is 0
                        (including the padded columns >= N)
    b_ref: (1, Npad)    zero-padded bias row
    o_ref: (Bt, Npad)   lane-dense output tile; the writeback DMA is clipped
                        to the unpadded (B, N) output array
    """
    o_ref[...] = (
        jnp.dot(x_ref[...], w_ref[...], preferred_element_type=jnp.float32)
        + b_ref[...]
    ).astype(o_ref.dtype)


def _choose_batch_tile(B, batch_tile):
    """Pick a legal, megacore-friendly batch tile."""
    bt = min(int(batch_tile), B)
    if B > 8:
        # Give the grid at least two steps so both v7x TensorCores get work
        # (dimension_semantics=("parallel",) shards grid steps across cores).
        bt = min(bt, _round_up(pl.cdiv(B, 2), 8))
    if bt < B:
        # Partial batch blocks: second-to-last block dim must be a multiple of 8.
        bt = max(8, (bt // 8) * 8)
    else:
        bt = B  # single full-extent block is always legal
    return bt


@functools.partial(jax.jit, static_argnames=("batch_tile",))
def output_forward(x, weight, bias, *, batch_tile=512):
    """Equivalent of Output.forward with multiple=True.

    x:      [B, n_sensor, n_type, dim_input]  (float32)
    weight: [N_OUTS, dim_input]  (row n = weight of the n-th Linear(dim_input, 1))
    bias:   [N_OUTS]
    returns [B, n_sensor, n_type]
    """
    B, S, T, D = x.shape
    N = S * T
    assert N == weight.shape[0] and D == weight.shape[1]

    K = N * D                            # 1728; full-extent last dim of flat x
    Npad = _round_up(N, LANE)            # 216 -> 256 lane-dense compute tile
    Bt = _choose_batch_tile(B, batch_tile)

    # Free reshape: contiguous flat view, no transpose, lane-dense HBM reads.
    x_flat = x.reshape(B, K)

    # Block-diagonal expansion of the 216 Linear(8, 1) weights:
    #   w_exp[n*D + d, n] = weight[n, d], all other entries zero.
    # Tiny (~1.7 MiB f32); in production this would be pre-expanded once.
    eye = jnp.eye(N, dtype=weight.dtype)
    w_exp = (weight[:, :, None] * eye[:, None, :]).reshape(K, N)
    w_exp = jnp.pad(w_exp, ((0, 0), (0, Npad - N)))          # (K, Npad)
    b_pad = jnp.pad(bias, (0, Npad - N)).reshape(1, Npad)    # (1, Npad)

    out = pl.pallas_call(
        _output_kernel,
        # Unpadded output: the writeback DMA clips the padded columns, so no
        # post-kernel slice / extra HBM round trip is needed.
        out_shape=jax.ShapeDtypeStruct((B, N), x.dtype),
        grid=(pl.cdiv(B, Bt),),
        in_specs=[
            pl.BlockSpec((Bt, K), lambda i: (i, 0)),      # x tile
            pl.BlockSpec((K, Npad), lambda i: (0, 0)),    # resident weights
            pl.BlockSpec((1, Npad), lambda i: (0, 0)),    # resident bias
        ],
        out_specs=pl.BlockSpec((Bt, Npad), lambda i: (i, 0)),
        compiler_params=pltpu.CompilerParams(
            dimension_semantics=("parallel",),
            vmem_limit_bytes=32 * 1024 * 1024,
        ),
    )(x_flat, w_exp, b_pad)

    return out.reshape(B, S, T)


def init_params(key):
    """Deterministic init mimicking nn.Linear default (uniform +/- 1/sqrt(fan_in))."""
    kw, kb = jax.random.split(key)
    bound = 1.0 / jnp.sqrt(jnp.float32(DIM_INPUT))
    weight = jax.random.uniform(
        kw, (N_OUTS, DIM_INPUT), dtype=jnp.float32, minval=-bound, maxval=bound)
    bias = jax.random.uniform(
        kb, (N_OUTS,), dtype=jnp.float32, minval=-bound, maxval=bound)
    return weight, bias


def _reference(x, weight, bias):
    """Pure-JAX f32 reference (per-series dot + bias)."""
    B = x.shape[0]
    xf = x.reshape(B, N_OUTS, DIM_INPUT)
    out = jnp.einsum("bnd,nd->bn", xf, weight) + bias[None, :]
    return out.reshape(B, MODE_DIMS[0], MODE_DIMS[1])


if __name__ == "__main__":
    key = jax.random.PRNGKey(0)
    k_x1, k_x2, k_p = jax.random.split(key, 3)
    weight, bias = init_params(k_p)

    # The MXU may round f32 operands toward bf16 at default matmul precision;
    # with an 8-term dot of O(1) values the error is << 1e-2.
    ATOL = RTOL = 1e-2

    # Case 1: tiny batch (single grid step, Bt == B == 2).
    B1 = 2
    x1 = jax.random.normal(
        k_x1, (B1, MODE_DIMS[0], MODE_DIMS[1], DIM_INPUT), dtype=jnp.float32)
    out1 = jax.block_until_ready(output_forward(x1, weight, bias))
    assert out1.shape == (B1, MODE_DIMS[0], MODE_DIMS[1])
    assert jnp.allclose(out1, _reference(x1, weight, bias), atol=ATOL, rtol=RTOL)

    # Case 2: explicit small tile -> 3 grid steps, partial final batch block.
    B2 = 20
    x2 = jax.random.normal(
        k_x2, (B2, MODE_DIMS[0], MODE_DIMS[1], DIM_INPUT), dtype=jnp.float32)
    out2 = jax.block_until_ready(output_forward(x2, weight, bias, batch_tile=8))
    assert out2.shape == (B2, MODE_DIMS[0], MODE_DIMS[1])
    assert jnp.allclose(out2, _reference(x2, weight, bias), atol=ATOL, rtol=RTOL)

    # Case 2b: default tile choice -> Bt=16, 2 grid steps, clipped final block.
    out2b = jax.block_until_ready(output_forward(x2, weight, bias))
    assert out2b.shape == (B2, MODE_DIMS[0], MODE_DIMS[1])
    assert jnp.allclose(out2b, _reference(x2, weight, bias), atol=ATOL, rtol=RTOL)

    print("KERNEL_OK")
</pallas_src>

<mosaic_0001>
module attributes {stable_mosaic.version = 11 : i64} {
  func.func @_output_kernel(%arg0: i32, %arg1: memref<2x1728xf32, #tpu.memory_space<vmem>>, %arg2: memref<1728x256xf32, #tpu.memory_space<vmem>>, %arg3: memref<1x256xf32, #tpu.memory_space<vmem>>, %arg4: memref<2x256xf32, #tpu.memory_space<vmem>>) attributes {dimension_semantics = [#tpu.dimension_semantics<parallel>], iteration_bounds = array<i64: 1>, scalar_prefetch = 0 : i64, scratch_operands = 0 : i64, tpu.core_type = #tpu.core_type<tc>, window_params = [{transform_indices = @transform_0, window_bounds = array<i64: 2, 1728>}, {pipeline_mode = #tpu.pipeline_mode<synchronous>, transform_indices = @transform_1, window_bounds = array<i64: 1728, 256>}, {pipeline_mode = #tpu.pipeline_mode<synchronous>, transform_indices = @transform_2, window_bounds = array<i64: 1, 256>}, {transform_indices = @transform_3, window_bounds = array<i64: 2, 256>}]} {
    %c0 = arith.constant 0 : index
    %c0_0 = arith.constant 0 : index
    %0 = vector.load %arg1[%c0, %c0_0] : memref<2x1728xf32, #tpu.memory_space<vmem>>, vector<2x1728xf32>
    %c0_1 = arith.constant 0 : index
    %c0_2 = arith.constant 0 : index
    %1 = vector.load %arg2[%c0_1, %c0_2] : memref<1728x256xf32, #tpu.memory_space<vmem>>, vector<1728x256xf32>
    %cst = arith.constant dense<0.000000e+00> : vector<2x256xf32>
    %2 = tpu.matmul %0, %1, %cst {dimension_numbers = #tpu.dot_dimension_numbers<[1], [0], [0], [1], [0, 0, 1, 1], [], []>} : vector<2x1728xf32>, vector<1728x256xf32>, vector<2x256xf32> -> vector<2x256xf32>
    %c0_3 = arith.constant 0 : index
    %c0_4 = arith.constant 0 : index
    %3 = vector.load %arg3[%c0_3, %c0_4] : memref<1x256xf32, #tpu.memory_space<vmem>>, vector<1x256xf32>
    %4 = vector.broadcast %3 : vector<1x256xf32> to vector<2x256xf32>
    %5 = arith.addf %2, %4 : vector<2x256xf32>
    %c0_5 = arith.constant 0 : index
    %c0_6 = arith.constant 0 : index
    %6 = vector.load %arg4[%c0_5, %c0_6] : memref<2x256xf32, #tpu.memory_space<vmem>>, vector<2x256xf32>
    tpu.vector_store %arg4[%c0_5, %c0_6], %5 {strides = array<i32>} : memref<2x256xf32, #tpu.memory_space<vmem>>, vector<2x256xf32>,
    return
  }
  func.func @transform_0(%arg0: i32) -> (i32, i32) {
    %c0_i32 = arith.constant 0 : i32
    %c0_i32_0 = arith.constant 0 : i32
    return %arg0, %c0_i32 : i32, i32
  }
  func.func @transform_1(%arg0: i32) -> (i32, i32) {
    %c0_i32 = arith.constant 0 : i32
    %c0_i32_0 = arith.constant 0 : i32
    %c0_i32_1 = arith.constant 0 : i32
    return %c0_i32, %c0_i32_0 : i32, i32
  }
  func.func @transform_2(%arg0: i32) -> (i32, i32) {
    %c0_i32 = arith.constant 0 : i32
    %c0_i32_0 = arith.constant 0 : i32
    %c0_i32_1 = arith.constant 0 : i32
    return %c0_i32, %c0_i32_0 : i32, i32
  }
  func.func @transform_3(%arg0: i32) -> (i32, i32) {
    %c0_i32 = arith.constant 0 : i32
    %c0_i32_0 = arith.constant 0 : i32
    return %arg0, %c0_i32 : i32, i32
  }
}

</mosaic_0001>

<bundles_post_ra>
// kernel: output_forward.1
= control target key start
LH: loop header
LB: loop body
LE: loop exit
PB: predicated region body
PF: predicated region fallthrough
CT: control target
= control target key end

     0   :  { %vm492_vm0 = vcmask 523264   ;;  %vm1058_vm1 = vcmask 1041408   ;;  %s2460_s1 = inlined_call_operand.vmem [shape: f32[1728,256], index: 1, kind: input, shape index: {}]   ;;  %s2461_s0 = inlined_call_operand.vmem [shape: f32[2,1728], index: 0, kind: input, shape index: {}]   ;;  %s2462_s2 = inlined_call_operand.vmem [shape: f32[1,256], index: 2, kind: input, shape index: {}]   ;;  %s2463_s3 = inlined_call_operand.vmem [shape: f32[2,216], index: 3, kind: output, shape index: {}]  }
   0x1   :  { %v48_v0 = vld [vmem:[%s2460_s1 + $0xf0] sm:$0xff]  ;;  %v46_v3 = vld [vmem:[%s2460_s1 + $0xe0] sm:$0xff] }
   0x2   :  { %v80_v1 = vld [vmem:[%s2460_s1 + $0x1f0] sm:$0xff]  ;;  %495 = vmatpush.msra.mxu0 %v48_v0  ;;  %v78_v4 = vld [vmem:[%s2460_s1 + $0x1e0] sm:$0xff] }
   0x3   :  { %v112_v2 = vld [vmem:[%s2460_s1 + $0x2f0] sm:$0xff]  ;;  %515 = vmatpush.msra.mxu1 %v80_v1  ;;  %v110_v5 = vld [vmem:[%s2460_s1 + $0x2e0] sm:$0xff] }
   0x4   :  { %535 = vmatpush.msra.mxu2 %v112_v2  ;;  %v144_v6 = vld [vmem:[%s2460_s1 + $0x3f0] sm:$0xff]  ;;  %496 = vmatpush.msra.mxu0 %v46_v3  ;;  %v142_v10 = vld [vmem:[%s2460_s1 + $0x3e0] sm:$0xff] }
   0x5   :  { %v44_v7 = vld [vmem:[%s2460_s1 + $0xd0] sm:$0xff]  ;;  %516 = vmatpush.msra.mxu1 %v78_v4  ;;  %555 = vmatpush.msra.mxu3 %v144_v6  ;;  %v42_v11 = vld [vmem:[%s2460_s1 + $0xc0] sm:$0xff] }
   0x6   :  { %v76_v8 = vld [vmem:[%s2460_s1 + $0x1d0] sm:$0xff]  ;;  %536 = vmatpush.msra.mxu2 %v110_v5  ;;  %v74_v12 = vld [vmem:[%s2460_s1 + $0x1c0] sm:$0xff]  ;;  %497 = vmatpush.msra.mxu0 %v44_v7 }
   0x7   :  { %v108_v9 = vld [vmem:[%s2460_s1 + $0x2d0] sm:$0xff]  ;;  %517 = vmatpush.msra.mxu1 %v76_v8  ;;  %v106_v13 = vld [vmem:[%s2460_s1 + $0x2c0] sm:$0xff]  ;;  %556 = vmatpush.msra.mxu3 %v142_v10 }
   0x8   :  { %v140_v14 = vld [vmem:[%s2460_s1 + $0x3d0] sm:$0xff]  ;;  %537 = vmatpush.msra.mxu2 %v108_v9  ;;  %498 = vmatpush.msra.mxu0 %v42_v11  ;;  %v138_v18 = vld [vmem:[%s2460_s1 + $0x3c0] sm:$0xff] }
   0x9   :  { %v40_v15 = vld [vmem:[%s2460_s1 + $0xb0] sm:$0xff]  ;;  %518 = vmatpush.msra.mxu1 %v74_v12  ;;  %557 = vmatpush.msra.mxu3 %v140_v14  ;;  %v38_v19 = vld [vmem:[%s2460_s1 + $0xa0] sm:$0xff] }
   0xa   :  { %v72_v16 = vld [vmem:[%s2460_s1 + $0x1b0] sm:$0xff]  ;;  %538 = vmatpush.msra.mxu2 %v106_v13  ;;  %v70_v20 = vld [vmem:[%s2460_s1 + $0x1a0] sm:$0xff]  ;;  %499 = vmatpush.msra.mxu0 %v40_v15 }
   0xb   :  { %v104_v17 = vld [vmem:[%s2460_s1 + $0x2b0] sm:$0xff]  ;;  %519 = vmatpush.msra.mxu1 %v72_v16  ;;  %v102_v21 = vld [vmem:[%s2460_s1 + $0x2a0] sm:$0xff]  ;;  %558 = vmatpush.msra.mxu3 %v138_v18 }
   0xc   :  { %v136_v22 = vld [vmem:[%s2460_s1 + $0x3b0] sm:$0xff]  ;;  %539 = vmatpush.msra.mxu2 %v104_v17  ;;  %500 = vmatpush.msra.mxu0 %v38_v19  ;;  %v134_v26 = vld [vmem:[%s2460_s1 + $0x3a0] sm:$0xff] }
   0xd   :  { %v36_v23 = vld [vmem:[%s2460_s1 + $0x90] sm:$0xff]  ;;  %520 = vmatpush.msra.mxu1 %v70_v20  ;;  %559 = vmatpush.msra.mxu3 %v136_v22  ;;  %v34_v27 = vld [vmem:[%s2460_s1 + $0x80] sm:$0xff] }
   0xe   :  { %v68_v24 = vld [vmem:[%s2460_s1 + $0x190] sm:$0xff]  ;;  %540 = vmatpush.msra.mxu2 %v102_v21  ;;  %v66_v28 = vld [vmem:[%s2460_s1 + $0x180] sm:$0xff]  ;;  %501 = vmatpush.msra.mxu0 %v36_v23 }
   0xf   :  { %v100_v25 = vld [vmem:[%s2460_s1 + $0x290] sm:$0xff]  ;;  %521 = vmatpush.msra.mxu1 %v68_v24  ;;  %v98_v29 = vld [vmem:[%s2460_s1 + $0x280] sm:$0xff]  ;;  %560 = vmatpush.msra.mxu3 %v134_v26 }
  0x10   :  { %v132_v30 = vld [vmem:[%s2460_s1 + $0x390] sm:$0xff]  ;;  %541 = vmatpush.msra.mxu2 %v100_v25  ;;  %502 = vmatpush.msra.mxu0 %v34_v27  ;;  %v130_v34 = vld [vmem:[%s2460_s1 + $0x380] sm:$0xff] }
  0x11   :  { %v32_v31 = vld [vmem:[%s2460_s1 + $0x70] sm:$0xff]  ;;  %522 = vmatpush.msra.mxu1 %v66_v28  ;;  %561 = vmatpush.msra.mxu3 %v132_v30  ;;  %v30_v35 = vld [vmem:[%s2460_s1 + $0x60] sm:$0xff] }
  0x12   :  { %v64_v32 = vld [vmem:[%s2460_s1 + $0x170] sm:$0xff]  ;;  %542 = vmatpush.msra.mxu2 %v98_v29  ;;  %v62_v36 = vld [vmem:[%s2460_s1 + $0x160] sm:$0xff]  ;;  %503 = vmatpush.msra.mxu0 %v32_v31 }
  0x13   :  { %v96_v33 = vld [vmem:[%s2460_s1 + $0x270] sm:$0xff]  ;;  %523 = vmatpush.msra.mxu1 %v64_v32  ;;  %v94_v37 = vld [vmem:[%s2460_s1 + $0x260] sm:$0xff]  ;;  %562 = vmatpush.msra.mxu3 %v130_v34 }
  0x14   :  { %v128_v38 = vld [vmem:[%s2460_s1 + $0x370] sm:$0xff]  ;;  %543 = vmatpush.msra.mxu2 %v96_v33  ;;  %504 = vmatpush.msra.mxu0 %v30_v35  ;;  %v126_v42 = vld [vmem:[%s2460_s1 + $0x360] sm:$0xff] }
  0x15   :  { %v28_v39 = vld [vmem:[%s2460_s1 + $0x50] sm:$0xff]  ;;  %524 = vmatpush.msra.mxu1 %v62_v36  ;;  %563 = vmatpush.msra.mxu3 %v128_v38  ;;  %v26_v43 = vld [vmem:[%s2460_s1 + $0x40] sm:$0xff] }
  0x16   :  { %v60_v40 = vld [vmem:[%s2460_s1 + $0x150] sm:$0xff]  ;;  %544 = vmatpush.msra.mxu2 %v94_v37  ;;  %v58_v44 = vld [vmem:[%s2460_s1 + $0x140] sm:$0xff]  ;;  %505 = vmatpush.msra.mxu0 %v28_v39 }
  0x17   :  { %v92_v41 = vld [vmem:[%s2460_s1 + $0x250] sm:$0xff]  ;;  %525 = vmatpush.msra.mxu1 %v60_v40  ;;  %v90_v45 = vld [vmem:[%s2460_s1 + $0x240] sm:$0xff]  ;;  %564 = vmatpush.msra.mxu3 %v126_v42  ;;  %v15_v42 = vld [vmem:[%s2461_s0 + $0x8] sm:$0xff] }
  0x18   :  { %v124_v46 = vld [vmem:[%s2460_s1 + $0x350] sm:$0xff]  ;;  %545 = vmatpush.msra.mxu2 %v92_v41  ;;  %506 = vmatpush.msra.mxu0 %v26_v43  ;;  %v122_v50 = vld [vmem:[%s2460_s1 + $0x340] sm:$0xff]  ;;  %462 = vst [vmem:[#allocation1 + $0x20] ss:$4 sm:$0xff] %v15_v42 }
  0x19   :  { %v24_v47 = vld [vmem:[%s2460_s1 + $0x30] sm:$0xff]  ;;  %526 = vmatpush.msra.mxu1 %v58_v44  ;;  %565 = vmatpush.msra.mxu3 %v124_v46  ;;  %v22_v51 = vld [vmem:[%s2460_s1 + $0x20] sm:$0xff] }
  0x1a   :  { %v56_v48 = vld [vmem:[%s2460_s1 + $0x130] sm:$0xff]  ;;  %546 = vmatpush.msra.mxu2 %v90_v45  ;;  %v54_v52 = vld [vmem:[%s2460_s1 + $0x120] sm:$0xff]  ;;  %507 = vmatpush.msra.mxu0 %v24_v47 }
  0x1b   :  { %v88_v49 = vld [vmem:[%s2460_s1 + $0x230] sm:$0xff]  ;;  %527 = vmatpush.msra.mxu1 %v56_v48  ;;  %v86_v53 = vld [vmem:[%s2460_s1 + $0x220] sm:$0xff]  ;;  %566 = vmatpush.msra.mxu3 %v122_v50 }
  0x1c   :  { %v120_v54 = vld [vmem:[%s2460_s1 + $0x330] sm:$0xff]  ;;  %547 = vmatpush.msra.mxu2 %v88_v49  ;;  %508 = vmatpush.msra.mxu0 %v22_v51  ;;  %v118_v58 = vld [vmem:[%s2460_s1 + $0x320] sm:$0xff] }
  0x1d   :  { %v20_v55 = vld [vmem:[%s2460_s1 + $0x10] sm:$0xff]  ;;  %528 = vmatpush.msra.mxu1 %v54_v52  ;;  %567 = vmatpush.msra.mxu3 %v120_v54  ;;  %v18_v59 = vld [vmem:[%s2460_s1] sm:$0xff] }
  0x1e   :  { %v52_v56 = vld [vmem:[%s2460_s1 + $0x110] sm:$0xff]  ;;  %548 = vmatpush.msra.mxu2 %v86_v53  ;;  %v50_v60 = vld [vmem:[%s2460_s1 + $0x100] sm:$0xff]  ;;  %509 = vmatpush.msra.mxu0 %v20_v55 }
  0x1f   :  { %v84_v57 = vld [vmem:[%s2460_s1 + $0x210] sm:$0xff]  ;;  %529 = vmatpush.msra.mxu1 %v52_v56  ;;  %v82_v61 = vld [vmem:[%s2460_s1 + $0x200] sm:$0xff]  ;;  %568 = vmatpush.msra.mxu3 %v118_v58 }
  0x20   :  { %v116_v62 = vld [vmem:[%s2460_s1 + $0x310] sm:$0xff]  ;;  %549 = vmatpush.msra.mxu2 %v84_v57  ;;  %510 = vmatpush.msra.mxu0 %v18_v59  ;;  %v114_v2 = vld [vmem:[%s2460_s1 + $0x300] sm:$0xff] }
  0x21   :  { %v176_v63 = vld [vmem:[%s2460_s1 + $0x4f0] sm:$0xff]  ;;  %530 = vmatpush.msra.mxu1 %v50_v60  ;;  %569 = vmatpush.msra.mxu3 %v116_v62  ;;  %v174_v3 = vld [vmem:[%s2460_s1 + $0x4e0] sm:$0xff]  ;;  %v17_v62 = vld [vmem:[%s2461_s0 + $0x18] sm:$0xf] }
  0x22   :  { %v208_v0 = vld [vmem:[%s2460_s1 + $0x5f0] sm:$0xff]  ;;  %550 = vmatpush.msra.mxu2 %v82_v61  ;;  %v206_v4 = vld [vmem:[%s2460_s1 + $0x5e0] sm:$0xff]  ;;  %575 = vmatpush.msrb.mxu0 %v176_v63 }
  0x23   :  { %v240_v1 = vld [vmem:[%s2460_s1 + $0x6f0] sm:$0xff]  ;;  %595 = vmatpush.msrb.mxu1 %v208_v0  ;;  %v238_v5 = vld [vmem:[%s2460_s1 + $0x6e0] sm:$0xff]  ;;  %570 = vmatpush.msra.mxu3 %v114_v2  ;;  %v1471_v2 = vld.sshfl [vmem:[#allocation1 + $0x28] sm:$0xff pattern:$0x73625140] }
  0x24   :  { %v272_v6 = vld [vmem:[%s2460_s1 + $0x7f0] sm:$0xff]  ;;  %615 = vmatpush.msrb.mxu2 %v240_v1  ;;  %576 = vmatpush.msrb.mxu0 %v174_v3  ;;  %v270_v10 = vld [vmem:[%s2460_s1 + $0x7e0] sm:$0xff]  ;;  %v1469_v1 = vld.sshfl [vmem:[#allocation1 + $0x38] sm:$0xff pattern:$0x73625140] }
  0x25   :  { %v172_v7 = vld [vmem:[%s2460_s1 + $0x4d0] sm:$0xff]  ;;  %596 = vmatpush.msrb.mxu1 %v206_v4  ;;  %635 = vmatpush.msrb.mxu3 %v272_v6  ;;  %v170_v11 = vld [vmem:[%s2460_s1 + $0x4c0] sm:$0xff] }
  0x26   :  { %v204_v8 = vld [vmem:[%s2460_s1 + $0x5d0] sm:$0xff]  ;;  %616 = vmatpush.msrb.mxu2 %v238_v5  ;;  %v202_v12 = vld [vmem:[%s2460_s1 + $0x5c0] sm:$0xff]  ;;  %577 = vmatpush.msrb.mxu0 %v172_v7 }
  0x27   :  { %v236_v9 = vld [vmem:[%s2460_s1 + $0x6d0] sm:$0xff]  ;;  %597 = vmatpush.msrb.mxu1 %v204_v8  ;;  %v234_v13 = vld [vmem:[%s2460_s1 + $0x6c0] sm:$0xff]  ;;  %636 = vmatpush.msrb.mxu3 %v270_v10 }
  0x28   :  { %v268_v14 = vld [vmem:[%s2460_s1 + $0x7d0] sm:$0xff]  ;;  %617 = vmatpush.msrb.mxu2 %v236_v9  ;;  %578 = vmatpush.msrb.mxu0 %v170_v11  ;;  %v266_v18 = vld [vmem:[%s2460_s1 + $0x7c0] sm:$0xff] }
  0x29   :  { %v168_v15 = vld [vmem:[%s2460_s1 + $0x4b0] sm:$0xff]  ;;  %598 = vmatpush.msrb.mxu1 %v202_v12  ;;  %637 = vmatpush.msrb.mxu3 %v268_v14  ;;  %v166_v19 = vld [vmem:[%s2460_s1 + $0x4a0] sm:$0xff] }
  0x2a   :  { %v200_v16 = vld [vmem:[%s2460_s1 + $0x5b0] sm:$0xff]  ;;  %618 = vmatpush.msrb.mxu2 %v234_v13  ;;  %v198_v20 = vld [vmem:[%s2460_s1 + $0x5a0] sm:$0xff]  ;;  %579 = vmatpush.msrb.mxu0 %v168_v15 }
  0x2b   :  { %v232_v17 = vld [vmem:[%s2460_s1 + $0x6b0] sm:$0xff]  ;;  %599 = vmatpush.msrb.mxu1 %v200_v16  ;;  %v230_v21 = vld [vmem:[%s2460_s1 + $0x6a0] sm:$0xff]  ;;  %638 = vmatpush.msrb.mxu3 %v266_v18 }
  0x2c   :  { %v264_v22 = vld [vmem:[%s2460_s1 + $0x7b0] sm:$0xff]  ;;  %619 = vmatpush.msrb.mxu2 %v232_v17  ;;  %v14_v25 = vld [vmem:[%s2461_s0] sm:$0xff]  ;;  %580 = vmatpush.msrb.mxu0 %v166_v19 }
  0x2d   :  { %v164_v23 = vld [vmem:[%s2460_s1 + $0x490] sm:$0xff]  ;;  %600 = vmatpush.msrb.mxu1 %v198_v20  ;;  %v262_v27 = vld [vmem:[%s2460_s1 + $0x7a0] sm:$0xff]  ;;  %460 = vst [vmem:[#allocation1] ss:$4 sm:$0xff] %v14_v25  ;;  %639 = vmatpush.msrb.mxu3 %v264_v22 }
  0x2e   :  { %v196_v24 = vld [vmem:[%s2460_s1 + $0x590] sm:$0xff]  ;;  %620 = vmatpush.msrb.mxu2 %v230_v21  ;;  %v162_v28 = vld [vmem:[%s2460_s1 + $0x480] sm:$0xff]  ;;  %581 = vmatpush.msrb.mxu0 %v164_v23 }
  0x2f   :  { %v228_v26 = vld [vmem:[%s2460_s1 + $0x690] sm:$0xff]  ;;  %v194_v29 = vld [vmem:[%s2460_s1 + $0x580] sm:$0xff]  ;;  %601 = vmatpush.msrb.mxu1 %v196_v24  ;;  %640 = vmatpush.msrb.mxu3 %v262_v27 }
  0x30   :  { %v226_v30 = vld [vmem:[%s2460_s1 + $0x680] sm:$0xff]  ;;  %v260_v31 = vld [vmem:[%s2460_s1 + $0x790] sm:$0xff]  ;;  %621 = vmatpush.msrb.mxu2 %v228_v26  ;;  %582 = vmatpush.msrb.mxu0 %v162_v28 }
  0x31   :  { %v160_v32 = vld [vmem:[%s2460_s1 + $0x470] sm:$0xff]  ;;  %v258_v35 = vld [vmem:[%s2460_s1 + $0x780] sm:$0xff]  ;;  %602 = vmatpush.msrb.mxu1 %v194_v29  ;;  %641 = vmatpush.msrb.mxu3 %v260_v31 }
  0x32   :  { %v192_v33 = vld [vmem:[%s2460_s1 + $0x570] sm:$0xff]  ;;  %v158_v36 = vld [vmem:[%s2460_s1 + $0x460] sm:$0xff]  ;;  %622 = vmatpush.msrb.mxu2 %v226_v30  ;;  %583 = vmatpush.msrb.mxu0 %v160_v32 }
  0x33   :  { %v224_v34 = vld [vmem:[%s2460_s1 + $0x670] sm:$0xff]  ;;  %v190_v37 = vld [vmem:[%s2460_s1 + $0x560] sm:$0xff]  ;;  %603 = vmatpush.msrb.mxu1 %v192_v33  ;;  %642 = vmatpush.msrb.mxu3 %v258_v35 }
  0x34   :  { %v222_v38 = vld [vmem:[%s2460_s1 + $0x660] sm:$0xff]  ;;  %v256_v39 = vld [vmem:[%s2460_s1 + $0x770] sm:$0xff]  ;;  %623 = vmatpush.msrb.mxu2 %v224_v34  ;;  %v1423_v48 = vld.sshfl [vmem:[#allocation1 + $0x8] sm:$0xff pattern:$0x73625140]  ;;  %584 = vmatpush.msrb.mxu0 %v158_v36 }
  0x35   :  { %v156_v40 = vld [vmem:[%s2460_s1 + $0x450] sm:$0xff]  ;;  %v254_v44 = vld [vmem:[%s2460_s1 + $0x760] sm:$0xff]  ;;  %604 = vmatpush.msrb.mxu1 %v190_v37  ;;  %v1427_v50 = vld.sshfl [vmem:[#allocation1 + $0x18] sm:$0xff pattern:$0x73625140]  ;;  %643 = vmatpush.msrb.mxu3 %v256_v39 }
  0x36   :  { %v188_v41 = vld [vmem:[%s2460_s1 + $0x550] sm:$0xff]  ;;  %v154_v46 = vld [vmem:[%s2460_s1 + $0x440] sm:$0xff]  ;;  %624 = vmatpush.msrb.mxu2 %v222_v38  ;;  %585 = vmatpush.msrb.mxu0 %v156_v40 }
  0x37   :  { %v220_v43 = vld [vmem:[%s2460_s1 + $0x650] sm:$0xff]  ;;  %v1421_v47 = vld.sshfl [vmem:[#allocation1] sm:$0xff pattern:$0x73625140]  ;;  %605 = vmatpush.msrb.mxu1 %v188_v41  ;;  %644 = vmatpush.msrb.mxu3 %v254_v44 }
  0x38   :  { %v16_v45 = vld [vmem:[%s2461_s0 + $0x10] sm:$0xff]  ;;  %v186_v51 = vld [vmem:[%s2460_s1 + $0x540] sm:$0xff]  ;;  %625 = vmatpush.msrb.mxu2 %v220_v43  ;;  %586 = vmatpush.msrb.mxu0 %v154_v46 }
  0x39   :  { %v1425_v49 = vld.sshfl [vmem:[#allocation1 + $0x10] sm:$0xff pattern:$0x73625140]  ;;  %v218_v52 = vld [vmem:[%s2460_s1 + $0x640] sm:$0xff]  ;;  %606 = vmatpush.msrb.mxu1 %v186_v51  ;;  %511 = vmatmul.f32.vlgmr.msra.gmra.mxu0 %v1421_v47 }
  0x3a   :  { %v252_v53 = vld [vmem:[%s2460_s1 + $0x750] sm:$0xff]  ;;  %471 = vst [vmem:[#allocation1] ss:$4 sm:$0xff] %v16_v45  ;;  %v250_v57 = vld [vmem:[%s2460_s1 + $0x740] sm:$0xff]  ;;  %626 = vmatpush.msrb.mxu2 %v218_v52  ;;  %531 = vmatmul.f32.vlgmr.msra.gmra.mxu1 %v1423_v48 }
  0x3b   :  { %v152_v54 = vld [vmem:[%s2460_s1 + $0x430] sm:$0xff]  ;;  %v150_v58 = vld [vmem:[%s2460_s1 + $0x420] sm:$0xff]  ;;  %645 = vmatpush.msrb.mxu3 %v252_v53  ;;  %551 = vmatmul.f32.vlgmr.msra.gmra.mxu2 %v1425_v49 }
  0x3c   :  { %v184_v55 = vld [vmem:[%s2460_s1 + $0x530] sm:$0xff]  ;;  %v182_v59 = vld [vmem:[%s2460_s1 + $0x520] sm:$0xff]  ;;  %587 = vmatpush.msrb.mxu0 %v152_v54  ;;  %571 = vmatmul.f32.vlgmr.msra.gmra.mxu3 %v1427_v50 }
  0x3d   :  { %v216_v56 = vld [vmem:[%s2460_s1 + $0x630] sm:$0xff]  ;;  %v214_v60 = vld [vmem:[%s2460_s1 + $0x620] sm:$0xff]  ;;  %607 = vmatpush.msrb.mxu1 %v184_v55  ;;  %646 = vmatpush.msrb.mxu3 %v250_v57 }
  0x3e   :  { %v248_v61 = vld [vmem:[%s2460_s1 + $0x730] sm:$0xff]  ;;  %v1467_v0 = vld.sshfl [vmem:[#allocation1 + $0x20] sm:$0xff pattern:$0x73625140]  ;;  %627 = vmatpush.msrb.mxu2 %v216_v56  ;;  %588 = vmatpush.msrb.mxu0 %v150_v58 }
  0x3f   :  { %v1465_v63 = vld.sshfl [vmem:[#allocation1 + $0x30] sm:$0xff pattern:$0x73625140]  ;;  %608 = vmatpush.msrb.mxu1 %v182_v59  ;;  %v246_v6 = vld [vmem:[%s2460_s1 + $0x720] sm:$0xff]  ;;  %647 = vmatpush.msrb.mxu3 %v248_v61 }
  0x40   :  { %v148_v3 = vld [vmem:[%s2460_s1 + $0x410] sm:$0xff]  ;;  %472 = vst [vmem:[#allocation1 + $0x20] ss:$4 sm:$0xff] %v17_v62  ;;  %628 = vmatpush.msrb.mxu2 %v214_v60  ;;  %v146_v7 = vld [vmem:[%s2460_s1 + $0x400] sm:$0xff] }
  0x41   :  { %v180_v4 = vld [vmem:[%s2460_s1 + $0x510] sm:$0xff]  ;;  %v178_v8 = vld [vmem:[%s2460_s1 + $0x500] sm:$0xff]  ;;  %589 = vmatpush.msrb.mxu0 %v148_v3  ;;  %648 = vmatpush.msrb.mxu3 %v246_v6 }
  0x42   :  { %v212_v5 = vld [vmem:[%s2460_s1 + $0x610] sm:$0xff]  ;;  %609 = vmatpush.msrb.mxu1 %v180_v4  ;;  %v210_v9 = vld [vmem:[%s2460_s1 + $0x600] sm:$0xff] }
  0x43   :  { %v244_v10 = vld [vmem:[%s2460_s1 + $0x710] sm:$0xff]  ;;  %629 = vmatpush.msrb.mxu2 %v212_v5  ;;  %590 = vmatpush.msrb.mxu0 %v146_v7  ;;  %v242_v14 = vld [vmem:[%s2460_s1 + $0x700] sm:$0xff] }
  0x44   :  { %610 = vmatpush.msrb.mxu1 %v178_v8  ;;  %v304_v11 = vld [vmem:[%s2460_s1 + $0x8f0] sm:$0xff]  ;;  %649 = vmatpush.msrb.mxu3 %v244_v10  ;;  %v302_v15 = vld [vmem:[%s2460_s1 + $0x8e0] sm:$0xff] }
  0x45   :  { %630 = vmatpush.msrb.mxu2 %v210_v9  ;;  %v336_v12 = vld [vmem:[%s2460_s1 + $0x9f0] sm:$0xff]  ;;  %655 = vmatpush.msra.mxu0 %v304_v11  ;;  %v334_v16 = vld [vmem:[%s2460_s1 + $0x9e0] sm:$0xff] }
  0x46   :  { %v368_v13 = vld [vmem:[%s2460_s1 + $0xaf0] sm:$0xff]  ;;  %675 = vmatpush.msra.mxu1 %v336_v12  ;;  %v366_v17 = vld [vmem:[%s2460_s1 + $0xae0] sm:$0xff]  ;;  %650 = vmatpush.msrb.mxu3 %v242_v14 }
  0x47   :  { %695 = vmatpush.msra.mxu2 %v368_v13  ;;  %v400_v18 = vld [vmem:[%s2460_s1 + $0xbf0] sm:$0xff]  ;;  %656 = vmatpush.msra.mxu0 %v302_v15  ;;  %v398_v22 = vld [vmem:[%s2460_s1 + $0xbe0] sm:$0xff] }
  0x48   :  { %v300_v19 = vld [vmem:[%s2460_s1 + $0x8d0] sm:$0xff]  ;;  %676 = vmatpush.msra.mxu1 %v334_v16  ;;  %715 = vmatpush.msra.mxu3 %v400_v18  ;;  %v298_v23 = vld [vmem:[%s2460_s1 + $0x8c0] sm:$0xff] }
  0x49   :  { %v332_v20 = vld [vmem:[%s2460_s1 + $0x9d0] sm:$0xff]  ;;  %696 = vmatpush.msra.mxu2 %v366_v17  ;;  %v330_v24 = vld [vmem:[%s2460_s1 + $0x9c0] sm:$0xff]  ;;  %657 = vmatpush.msra.mxu0 %v300_v19 }
  0x4a   :  { %v364_v21 = vld [vmem:[%s2460_s1 + $0xad0] sm:$0xff]  ;;  %677 = vmatpush.msra.mxu1 %v332_v20  ;;  %v362_v25 = vld [vmem:[%s2460_s1 + $0xac0] sm:$0xff]  ;;  %716 = vmatpush.msra.mxu3 %v398_v22 }
  0x4b   :  { %v396_v26 = vld [vmem:[%s2460_s1 + $0xbd0] sm:$0xff]  ;;  %697 = vmatpush.msra.mxu2 %v364_v21  ;;  %658 = vmatpush.msra.mxu0 %v298_v23  ;;  %v394_v30 = vld [vmem:[%s2460_s1 + $0xbc0] sm:$0xff]  ;;  %v49_v23 = vld [vmem:[%s2460_s1 + $0xf8] sm:$0xff] }
  0x4c   :  { %v296_v27 = vld [vmem:[%s2460_s1 + $0x8b0] sm:$0xff]  ;;  %678 = vmatpush.msra.mxu1 %v330_v24  ;;  %717 = vmatpush.msra.mxu3 %v396_v26  ;;  %v294_v31 = vld [vmem:[%s2460_s1 + $0x8a0] sm:$0xff]  ;;  %v1717_v26 = vld.sshfl [vmem:[#allocation1 + $0x18] sm:$0xff pattern:$0x73625140] }
  0x4d   :  { %v328_v28 = vld [vmem:[%s2460_s1 + $0x9b0] sm:$0xff]  ;;  %698 = vmatpush.msra.mxu2 %v362_v25  ;;  %659 = vmatpush.msra.mxu0 %v296_v27  ;;  %v326_v32 = vld [vmem:[%s2460_s1 + $0x9a0] sm:$0xff]  ;;  %v1715_v25 = vld.sshfl [vmem:[#allocation1 + $0x8] sm:$0xff pattern:$0x73625140] }
  0x4e   :  { %v360_v29 = vld [vmem:[%s2460_s1 + $0xab0] sm:$0xff]  ;;  %631 = vmatmul.f32.vlgmr.msrb.gmra.mxu2 %v1465_v63  ;;  %679 = vmatpush.msra.mxu1 %v328_v28  ;;  %v358_v33 = vld [vmem:[%s2460_s1 + $0xaa0] sm:$0xff] }
  0x4f   :  { %699 = vmatpush.msra.mxu2 %v360_v29  ;;  %718 = vmatpush.msra.mxu3 %v394_v30  ;;  %v392_v34 = vld [vmem:[%s2460_s1 + $0xbb0] sm:$0xff]  ;;  %v390_v38 = vld [vmem:[%s2460_s1 + $0xba0] sm:$0xff]  ;;  %v47_v29 = vld [vmem:[%s2460_s1 + $0xe8] sm:$0xff] }
  0x50   :  { %591 = vmatmul.f32.vlgmr.msrb.gmra.mxu0 %v1467_v0  ;;  %651 = vmatmul.f32.vlgmr.msrb.gmra.mxu3 %v1469_v1  ;;  %v292_v35 = vld [vmem:[%s2460_s1 + $0x890] sm:$0xff]  ;;  %v290_v39 = vld [vmem:[%s2460_s1 + $0x880] sm:$0xff]  ;;  %v81_v30 = vld [vmem:[%s2460_s1 + $0x1f8] sm:$0xff] }
  0x51   :  { %660 = vmatpush.msra.mxu0 %v294_v31  ;;  %v324_v36 = vld [vmem:[%s2460_s1 + $0x990] sm:$0xff]  ;;  %680 = vmatpush.msra.mxu1 %v326_v32  ;;  %v322_v40 = vld [vmem:[%s2460_s1 + $0x980] sm:$0xff] }
  0x52   :  { %700 = vmatpush.msra.mxu2 %v358_v33  ;;  %v356_v37 = vld [vmem:[%s2460_s1 + $0xa90] sm:$0xff]  ;;  %719 = vmatpush.msra.mxu3 %v392_v34  ;;  %v354_v41 = vld [vmem:[%s2460_s1 + $0xa80] sm:$0xff]  ;;  %v45_v33 = vld [vmem:[%s2460_s1 + $0xd8] sm:$0xff] }
  0x53   :  { %611 = vmatmul.f32.vlgmr.msrb.gmra.mxu1 %v1471_v2  ;;  %661 = vmatpush.msra.mxu0 %v292_v35  ;;  %v388_v42 = vld [vmem:[%s2460_s1 + $0xb90] sm:$0xff]  ;;  %v386_v46 = vld [vmem:[%s2460_s1 + $0xb80] sm:$0xff]  ;;  %v79_v34 = vld [vmem:[%s2460_s1 + $0x1e8] sm:$0xff] }
  0x54   :  { %681 = vmatpush.msra.mxu1 %v324_v36  ;;  %701 = vmatpush.msra.mxu2 %v356_v37  ;;  %v288_v43 = vld [vmem:[%s2460_s1 + $0x870] sm:$0xff]  ;;  %v286_v51 = vld [vmem:[%s2460_s1 + $0x860] sm:$0xff]  ;;  %v43_v37 = vld [vmem:[%s2460_s1 + $0xc8] sm:$0xff] }
  0x55   :  { %720 = vmatpush.msra.mxu3 %v390_v38  ;;  %v320_v44 = vld [vmem:[%s2460_s1 + $0x970] sm:$0xff]  ;;  %662 = vmatpush.msra.mxu0 %v290_v39  ;;  %v318_v52 = vld [vmem:[%s2460_s1 + $0x960] sm:$0xff]  ;;  %v77_v38 = vld [vmem:[%s2460_s1 + $0x1d8] sm:$0xff] }
  0x56   :  { %682 = vmatpush.msra.mxu1 %v322_v40  ;;  %v352_v45 = vld [vmem:[%s2460_s1 + $0xa70] sm:$0xff]  ;;  %702 = vmatpush.msra.mxu2 %v354_v41  ;;  %v350_v53 = vld [vmem:[%s2460_s1 + $0xa60] sm:$0xff]  ;;  %v41_v41 = vld [vmem:[%s2460_s1 + $0xb8] sm:$0xff] }
  0x57   :  { %721 = vmatpush.msra.mxu3 %v388_v42  ;;  %663 = vmatpush.msra.mxu0 %v288_v43  ;;  %v384_v54 = vld [vmem:[%s2460_s1 + $0xb70] sm:$0xff]  ;;  %v382_v58 = vld [vmem:[%s2460_s1 + $0xb60] sm:$0xff]  ;;  %v75_v42 = vld [vmem:[%s2460_s1 + $0x1c8] sm:$0xff] }
  0x58   :  { %683 = vmatpush.msra.mxu1 %v320_v44  ;;  %703 = vmatpush.msra.mxu2 %v352_v45  ;;  %v284_v55 = vld [vmem:[%s2460_s1 + $0x850] sm:$0xff]  ;;  %v282_v59 = vld [vmem:[%s2460_s1 + $0x840] sm:$0xff]  ;;  %v39_v45 = vld [vmem:[%s2460_s1 + $0xa8] sm:$0xff] }
  0x59   :  { %722 = vmatpush.msra.mxu3 %v386_v46  ;;  %v316_v56 = vld [vmem:[%s2460_s1 + $0x950] sm:$0xff]  ;;  %664 = vmatpush.msra.mxu0 %v286_v51  ;;  %v314_v60 = vld [vmem:[%s2460_s1 + $0x940] sm:$0xff]  ;;  %v73_v46 = vld [vmem:[%s2460_s1 + $0x1b8] sm:$0xff] }
  0x5a   :  { %684 = vmatpush.msra.mxu1 %v318_v52  ;;  %v348_v57 = vld [vmem:[%s2460_s1 + $0xa50] sm:$0xff]  ;;  %704 = vmatpush.msra.mxu2 %v350_v53  ;;  %v346_v61 = vld [vmem:[%s2460_s1 + $0xa40] sm:$0xff]  ;;  %v37_v53 = vld [vmem:[%s2460_s1 + $0x98] sm:$0xff] }
  0x5b   :  { %723 = vmatpush.msra.mxu3 %v384_v54  ;;  %665 = vmatpush.msra.mxu0 %v284_v55  ;;  %v380_v62 = vld [vmem:[%s2460_s1 + $0xb50] sm:$0xff]  ;;  %v378_v6 = vld [vmem:[%s2460_s1 + $0xb40] sm:$0xff]  ;;  %v71_v54 = vld [vmem:[%s2460_s1 + $0x1a8] sm:$0xff] }
  0x5c   :  { %685 = vmatpush.msra.mxu1 %v316_v56  ;;  %705 = vmatpush.msra.mxu2 %v348_v57  ;;  %v280_v3 = vld [vmem:[%s2460_s1 + $0x830] sm:$0xff]  ;;  %v278_v7 = vld [vmem:[%s2460_s1 + $0x820] sm:$0xff]  ;;  %v35_v57 = vld [vmem:[%s2460_s1 + $0x88] sm:$0xff] }
  0x5d   :  { %724 = vmatpush.msra.mxu3 %v382_v58  ;;  %v312_v4 = vld [vmem:[%s2460_s1 + $0x930] sm:$0xff]  ;;  %666 = vmatpush.msra.mxu0 %v282_v59  ;;  %v310_v8 = vld [vmem:[%s2460_s1 + $0x920] sm:$0xff]  ;;  %v69_v58 = vld [vmem:[%s2460_s1 + $0x198] sm:$0xff] }
  0x5e   :  { %686 = vmatpush.msra.mxu1 %v314_v60  ;;  %v344_v5 = vld [vmem:[%s2460_s1 + $0xa30] sm:$0xff]  ;;  %706 = vmatpush.msra.mxu2 %v346_v61  ;;  %v342_v9 = vld [vmem:[%s2460_s1 + $0xa20] sm:$0xff]  ;;  %v113_v59 = vld [vmem:[%s2460_s1 + $0x2f8] sm:$0xff] }
  0x5f   :  { %725 = vmatpush.msra.mxu3 %v380_v62  ;;  %667 = vmatpush.msra.mxu0 %v280_v3  ;;  %v376_v10 = vld [vmem:[%s2460_s1 + $0xb30] sm:$0xff]  ;;  %v374_v14 = vld [vmem:[%s2460_s1 + $0xb20] sm:$0xff]  ;;  %v33_v61 = vld [vmem:[%s2460_s1 + $0x78] sm:$0xff] }
  0x60   :  { %687 = vmatpush.msra.mxu1 %v312_v4  ;;  %707 = vmatpush.msra.mxu2 %v344_v5  ;;  %v276_v11 = vld [vmem:[%s2460_s1 + $0x810] sm:$0xff]  ;;  %v274_v15 = vld [vmem:[%s2460_s1 + $0x800] sm:$0xff]  ;;  %v67_v62 = vld [vmem:[%s2460_s1 + $0x188] sm:$0xff] }
  0x61   :  { %726 = vmatpush.msra.mxu3 %v378_v6  ;;  %v308_v12 = vld [vmem:[%s2460_s1 + $0x910] sm:$0xff]  ;;  %668 = vmatpush.msra.mxu0 %v278_v7  ;;  %v306_v16 = vld [vmem:[%s2460_s1 + $0x900] sm:$0xff]  ;;  %v111_v3 = vld [vmem:[%s2460_s1 + $0x2e8] sm:$0xff] }
  0x62   :  { %688 = vmatpush.msra.mxu1 %v310_v8  ;;  %v340_v13 = vld [vmem:[%s2460_s1 + $0xa10] sm:$0xff]  ;;  %708 = vmatpush.msra.mxu2 %v342_v9  ;;  %v338_v17 = vld [vmem:[%s2460_s1 + $0xa00] sm:$0xff]  ;;  %v31_v5 = vld [vmem:[%s2460_s1 + $0x68] sm:$0xff] }
  0x63   :  { %727 = vmatpush.msra.mxu3 %v376_v10  ;;  %669 = vmatpush.msra.mxu0 %v276_v11  ;;  %v372_v18 = vld [vmem:[%s2460_s1 + $0xb10] sm:$0xff]  ;;  %v1697_v19 = vld.sshfl [vmem:[#allocation1] sm:$0xff pattern:$0x73625140]  ;;  %v65_v6 = vld [vmem:[%s2460_s1 + $0x178] sm:$0xff] }
  0x64   :  { %689 = vmatpush.msra.mxu1 %v308_v12  ;;  %709 = vmatpush.msra.mxu2 %v340_v13  ;;  %v1699_v20 = vld.sshfl [vmem:[#allocation1 + $0x10] sm:$0xff pattern:$0x73625140]  ;;  %v370_v24 = vld [vmem:[%s2460_s1 + $0xb00] sm:$0xff]  ;;  %v109_v7 = vld [vmem:[%s2460_s1 + $0x2d8] sm:$0xff] }
  0x65   :  { %728 = vmatpush.msra.mxu3 %v374_v14  ;;  %670 = vmatpush.msra.mxu0 %v274_v15  ;;  %v432_v21 = vld [vmem:[%s2460_s1 + $0xcf0] sm:$0xff]  ;;  %v430_v27 = vld [vmem:[%s2460_s1 + $0xce0] sm:$0xff]  ;;  %v29_v9 = vld [vmem:[%s2460_s1 + $0x58] sm:$0xff] }
  0x66   :  { %690 = vmatpush.msra.mxu1 %v306_v16  ;;  %v448_v22 = vld [vmem:[%s2460_s1 + $0xd70] sm:$0xff]  ;;  %710 = vmatpush.msra.mxu2 %v338_v17  ;;  %v446_v28 = vld [vmem:[%s2460_s1 + $0xd60] sm:$0xff]  ;;  %v63_v10 = vld [vmem:[%s2460_s1 + $0x168] sm:$0xff] }
  0x67   :  { %729 = vmatpush.msra.mxu3 %v372_v18  ;;  %671 = vmatmul.f32.vlgmr.msra.gmra.mxu0 %v1697_v19  ;;  %v428_v31 = vld [vmem:[%s2460_s1 + $0xcd0] sm:$0xff]  ;;  %v426_v35 = vld [vmem:[%s2460_s1 + $0xcc0] sm:$0xff]  ;;  %v107_v11 = vld [vmem:[%s2460_s1 + $0x2c8] sm:$0xff] }
  0x68   :  { %711 = vmatmul.f32.vlgmr.msra.gmra.mxu2 %v1699_v20  ;;  %735 = vmatpush.msrb.mxu0 %v432_v21  ;;  %v444_v32 = vld [vmem:[%s2460_s1 + $0xd50] sm:$0xff]  ;;  %v442_v36 = vld [vmem:[%s2460_s1 + $0xd40] sm:$0xff]  ;;  %v27_v13 = vld [vmem:[%s2460_s1 + $0x48] sm:$0xff] }
  0x69   :  { %763 = vmatpush.msrb.mxu1 %v448_v22  ;;  %775 = vmatpush.msrb.mxu2 %v49_v23  ;;  %v424_v39 = vld [vmem:[%s2460_s1 + $0xcb0] sm:$0xff]  ;;  %v422_v43 = vld [vmem:[%s2460_s1 + $0xca0] sm:$0xff]  ;;  %v61_v14 = vld [vmem:[%s2460_s1 + $0x158] sm:$0xff] }
  0x6a   :  { %730 = vmatpush.msra.mxu3 %v370_v24  ;;  %691 = vmatmul.f32.vlgmr.msra.gmra.mxu1 %v1715_v25  ;;  %v440_v40 = vld [vmem:[%s2460_s1 + $0xd30] sm:$0xff]  ;;  %v438_v44 = vld [vmem:[%s2460_s1 + $0xd20] sm:$0xff]  ;;  %v105_v15 = vld [vmem:[%s2460_s1 + $0x2b8] sm:$0xff] }
  0x6b   :  { %731 = vmatmul.f32.vlgmr.msra.gmra.mxu3 %v1717_v26  ;;  %736 = vmatpush.msrb.mxu0 %v430_v27  ;;  %v420_v51 = vld [vmem:[%s2460_s1 + $0xc90] sm:$0xff]  ;;  %v418_v55 = vld [vmem:[%s2460_s1 + $0xc80] sm:$0xff]  ;;  %v25_v17 = vld [vmem:[%s2460_s1 + $0x38] sm:$0xff] }
  0x6c   :  { %764 = vmatpush.msrb.mxu1 %v446_v28  ;;  %776 = vmatpush.msrb.mxu2 %v47_v29  ;;  %v436_v52 = vld [vmem:[%s2460_s1 + $0xd10] sm:$0xff]  ;;  %v434_v56 = vld [vmem:[%s2460_s1 + $0xd00] sm:$0xff]  ;;  %v59_v18 = vld [vmem:[%s2460_s1 + $0x148] sm:$0xff] }
  0x6d   :  { %795 = vmatpush.msrb.mxu3 %v81_v30  ;;  %737 = vmatpush.msrb.mxu0 %v428_v31  ;;  %v416_v60 = vld [vmem:[%s2460_s1 + $0xc70] sm:$0xff]  ;;  %v414_v4 = vld [vmem:[%s2460_s1 + $0xc60] sm:$0xff]  ;;  %v103_v21 = vld [vmem:[%s2460_s1 + $0x2a8] sm:$0xff] }
  0x6e   :  { %765 = vmatpush.msrb.mxu1 %v444_v32  ;;  %777 = vmatpush.msrb.mxu2 %v45_v33  ;;  %v412_v8 = vld [vmem:[%s2460_s1 + $0xc50] sm:$0xff]  ;;  %v410_v12 = vld [vmem:[%s2460_s1 + $0xc40] sm:$0xff]  ;;  %v23_v23 = vld [vmem:[%s2460_s1 + $0x28] sm:$0xff] }
  0x6f   :  { %796 = vmatpush.msrb.mxu3 %v79_v34  ;;  %738 = vmatpush.msrb.mxu0 %v426_v35  ;;  %v408_v16 = vld [vmem:[%s2460_s1 + $0xc30] sm:$0xff]  ;;  %v406_v22 = vld [vmem:[%s2460_s1 + $0xc20] sm:$0xff]  ;;  %v57_v24 = vld [vmem:[%s2460_s1 + $0x138] sm:$0xff] }
  0x70   :  { %766 = vmatpush.msrb.mxu1 %v442_v36  ;;  %778 = vmatpush.msrb.mxu2 %v43_v37  ;;  %v101_v27 = vld [vmem:[%s2460_s1 + $0x298] sm:$0xff]  ;;  %v404_v28 = vld [vmem:[%s2460_s1 + $0xc10] sm:$0xff]  ;;  %v55_v30 = vld [vmem:[%s2460_s1 + $0x128] sm:$0xff] }
  0x71   :  { %797 = vmatpush.msrb.mxu3 %v77_v38  ;;  %739 = vmatpush.msrb.mxu0 %v424_v39  ;;  %v21_v29 = vld [vmem:[%s2460_s1 + $0x18] sm:$0xff]  ;;  %v99_v31 = vld [vmem:[%s2460_s1 + $0x288] sm:$0xff]  ;;  %v402_v32 = vld [vmem:[%s2460_s1 + $0xc00] sm:$0xff] }
  0x72   :  { %767 = vmatpush.msrb.mxu1 %v440_v40  ;;  %779 = vmatpush.msrb.mxu2 %v41_v41  ;;  %v19_v33 = vld [vmem:[%s2460_s1 + $0x8] sm:$0xff]  ;;  %v53_v34 = vld [vmem:[%s2460_s1 + $0x118] sm:$0xff]  ;;  %v1901_v35 = vld.sshfl [vmem:[#allocation1 + $0x20] sm:$0xff pattern:$0x73625140] }
  0x73   :  { %798 = vmatpush.msrb.mxu3 %v75_v42  ;;  %740 = vmatpush.msrb.mxu0 %v422_v43  ;;  %v97_v36 = vld [vmem:[%s2460_s1 + $0x278] sm:$0xff]  ;;  %v51_v39 = vld [vmem:[%s2460_s1 + $0x108] sm:$0xff] }
  0x74   :  { %768 = vmatpush.msrb.mxu1 %v438_v44  ;;  %780 = vmatpush.msrb.mxu2 %v39_v45  ;;  %v145_v37 = vld [vmem:[%s2460_s1 + $0x3f8] sm:$0xff]  ;;  %v1915_v40 = vld.sshfl [vmem:[#allocation1 + $0x28] sm:$0xff pattern:$0x73625140] }
  0x75   :  { %799 = vmatpush.msrb.mxu3 %v73_v46  ;;  %741 = vmatpush.msrb.mxu0 %v420_v51  ;;  %v177_v38 = vld [vmem:[%s2460_s1 + $0x4f8] sm:$0xff]  ;;  %v95_v41 = vld [vmem:[%s2460_s1 + $0x268] sm:$0xff] }
  0x76   :  { %769 = vmatpush.msrb.mxu1 %v436_v52  ;;  %781 = vmatpush.msrb.mxu2 %v37_v53  ;;  %v143_v42 = vld [vmem:[%s2460_s1 + $0x3e8] sm:$0xff]  ;;  %v209_v44 = vld [vmem:[%s2460_s1 + $0x5f8] sm:$0xff] }
  0x77   :  { %800 = vmatpush.msrb.mxu3 %v71_v54  ;;  %742 = vmatpush.msrb.mxu0 %v418_v55  ;;  %v175_v43 = vld [vmem:[%s2460_s1 + $0x4e8] sm:$0xff]  ;;  %v93_v45 = vld [vmem:[%s2460_s1 + $0x258] sm:$0xff] }
  0x78   :  { %770 = vmatpush.msrb.mxu1 %v434_v56  ;;  %782 = vmatpush.msrb.mxu2 %v35_v57  ;;  %v141_v46 = vld [vmem:[%s2460_s1 + $0x3d8] sm:$0xff]  ;;  %v207_v52 = vld [vmem:[%s2460_s1 + $0x5e8] sm:$0xff] }
  0x79   :  { %801 = vmatpush.msrb.mxu3 %v69_v58  ;;  %743 = vmatpush.msrb.mxu0 %v416_v60  ;;  %v173_v51 = vld [vmem:[%s2460_s1 + $0x4d8] sm:$0xff]  ;;  %v91_v53 = vld [vmem:[%s2460_s1 + $0x248] sm:$0xff] }
  0x7a   :  { %815 = vmatpush.msra.mxu1 %v113_v59  ;;  %783 = vmatpush.msrb.mxu2 %v33_v61  ;;  %v139_v54 = vld [vmem:[%s2460_s1 + $0x3c8] sm:$0xff]  ;;  %v205_v56 = vld [vmem:[%s2460_s1 + $0x5d8] sm:$0xff] }
  0x7b   :  { %802 = vmatpush.msrb.mxu3 %v67_v62  ;;  %744 = vmatpush.msrb.mxu0 %v414_v4  ;;  %v171_v55 = vld [vmem:[%s2460_s1 + $0x4c8] sm:$0xff]  ;;  %v89_v57 = vld [vmem:[%s2460_s1 + $0x238] sm:$0xff] }
  0x7c   :  { %816 = vmatpush.msra.mxu1 %v111_v3  ;;  %784 = vmatpush.msrb.mxu2 %v31_v5  ;;  %v137_v58 = vld [vmem:[%s2460_s1 + $0x3b8] sm:$0xff]  ;;  %v203_v60 = vld [vmem:[%s2460_s1 + $0x5c8] sm:$0xff] }
  0x7d   :  { %803 = vmatpush.msrb.mxu3 %v65_v6  ;;  %745 = vmatpush.msrb.mxu0 %v412_v8  ;;  %v169_v59 = vld [vmem:[%s2460_s1 + $0x4b8] sm:$0xff]  ;;  %v87_v61 = vld [vmem:[%s2460_s1 + $0x228] sm:$0xff] }
  0x7e   :  { %817 = vmatpush.msra.mxu1 %v109_v7  ;;  %785 = vmatpush.msrb.mxu2 %v29_v9  ;;  %v135_v62 = vld [vmem:[%s2460_s1 + $0x3a8] sm:$0xff]  ;;  %v201_v4 = vld [vmem:[%s2460_s1 + $0x5b8] sm:$0xff] }
  0x7f   :  { %804 = vmatpush.msrb.mxu3 %v63_v10  ;;  %746 = vmatpush.msrb.mxu0 %v410_v12  ;;  %v167_v3 = vld [vmem:[%s2460_s1 + $0x4a8] sm:$0xff]  ;;  %v85_v5 = vld [vmem:[%s2460_s1 + $0x218] sm:$0xff] }
  0x80   :  { %818 = vmatpush.msra.mxu1 %v107_v11  ;;  %786 = vmatpush.msrb.mxu2 %v27_v13  ;;  %v133_v6 = vld [vmem:[%s2460_s1 + $0x398] sm:$0xff]  ;;  %v199_v8 = vld [vmem:[%s2460_s1 + $0x5a8] sm:$0xff] }
  0x81   :  { %805 = vmatpush.msrb.mxu3 %v61_v14  ;;  %747 = vmatpush.msrb.mxu0 %v408_v16  ;;  %v165_v7 = vld [vmem:[%s2460_s1 + $0x498] sm:$0xff]  ;;  %v83_v9 = vld [vmem:[%s2460_s1 + $0x208] sm:$0xff] }
  0x82   :  { %819 = vmatpush.msra.mxu1 %v105_v15  ;;  %787 = vmatpush.msrb.mxu2 %v25_v17  ;;  %v131_v10 = vld [vmem:[%s2460_s1 + $0x388] sm:$0xff]  ;;  %v197_v12 = vld [vmem:[%s2460_s1 + $0x598] sm:$0xff] }
  0x83   :  { %806 = vmatpush.msrb.mxu3 %v59_v18  ;;  %748 = vmatpush.msrb.mxu0 %v406_v22  ;;  %v163_v11 = vld [vmem:[%s2460_s1 + $0x488] sm:$0xff]  ;;  %v241_v13 = vld [vmem:[%s2460_s1 + $0x6f8] sm:$0xff] }
  0x84   :  { %820 = vmatpush.msra.mxu1 %v103_v21  ;;  %788 = vmatpush.msrb.mxu2 %v23_v23  ;;  %v129_v14 = vld [vmem:[%s2460_s1 + $0x378] sm:$0xff]  ;;  %v195_v16 = vld [vmem:[%s2460_s1 + $0x588] sm:$0xff] }
  0x85   :  { %807 = vmatpush.msrb.mxu3 %v57_v24  ;;  %749 = vmatpush.msrb.mxu0 %v404_v28  ;;  %v161_v15 = vld [vmem:[%s2460_s1 + $0x478] sm:$0xff]  ;;  %v239_v17 = vld [vmem:[%s2460_s1 + $0x6e8] sm:$0xff] }
  0x86   :  { %821 = vmatpush.msra.mxu1 %v101_v27  ;;  %789 = vmatpush.msrb.mxu2 %v21_v29  ;;  %v127_v18 = vld [vmem:[%s2460_s1 + $0x368] sm:$0xff]  ;;  %v193_v22 = vld [vmem:[%s2460_s1 + $0x578] sm:$0xff] }
  0x87   :  { %808 = vmatpush.msrb.mxu3 %v55_v30  ;;  %750 = vmatpush.msrb.mxu0 %v402_v32  ;;  %v159_v21 = vld [vmem:[%s2460_s1 + $0x468] sm:$0xff]  ;;  %v237_v23 = vld [vmem:[%s2460_s1 + $0x6d8] sm:$0xff] }
  0x88   :  { %822 = vmatpush.msra.mxu1 %v99_v31  ;;  %790 = vmatpush.msrb.mxu2 %v19_v33  ;;  %v125_v24 = vld [vmem:[%s2460_s1 + $0x358] sm:$0xff]  ;;  %v191_v28 = vld [vmem:[%s2460_s1 + $0x568] sm:$0xff] }
  0x89   :  { %809 = vmatpush.msrb.mxu3 %v53_v34  ;;  %751 = vmatmul.f32.vlgmr.msrb.gmra.mxu0 %v1901_v35  ;;  %v157_v27 = vld [vmem:[%s2460_s1 + $0x458] sm:$0xff]  ;;  %v235_v29 = vld [vmem:[%s2460_s1 + $0x6c8] sm:$0xff] }
  0x8a   :  { %823 = vmatpush.msra.mxu1 %v97_v36  ;;  %835 = vmatpush.msra.mxu0 %v145_v37  ;;  %v123_v30 = vld [vmem:[%s2460_s1 + $0x348] sm:$0xff]  ;;  %v189_v32 = vld [vmem:[%s2460_s1 + $0x558] sm:$0xff] }
  0x8b   :  { %855 = vmatpush.msra.mxu2 %v177_v38  ;;  %810 = vmatpush.msrb.mxu3 %v51_v39  ;;  %v155_v31 = vld [vmem:[%s2460_s1 + $0x448] sm:$0xff]  ;;  %v233_v33 = vld [vmem:[%s2460_s1 + $0x6b8] sm:$0xff] }
  0x8c   :  { %1066 = vmatmul.msk.f32.vlgmr.msrb.gmra.mxu1 %vm492_vm0, %v1915_v40  ;;  %836 = vmatpush.msra.mxu0 %v143_v42  ;;  %v121_v34 = vld [vmem:[%s2460_s1 + $0x338] sm:$0xff]  ;;  %v187_v37 = vld [vmem:[%s2460_s1 + $0x548] sm:$0xff] }
  0x8d   :  { %824 = vmatpush.msra.mxu1 %v95_v41  ;;  %856 = vmatpush.msra.mxu2 %v175_v43  ;;  %v153_v36 = vld [vmem:[%s2460_s1 + $0x438] sm:$0xff]  ;;  %v231_v38 = vld [vmem:[%s2460_s1 + $0x6a8] sm:$0xff] }
  0x8e   :  { %875 = vmatpush.msra.mxu3 %v209_v44  ;;  %837 = vmatpush.msra.mxu0 %v141_v46  ;;  %v119_v39 = vld [vmem:[%s2460_s1 + $0x328] sm:$0xff]  ;;  %v185_v42 = vld [vmem:[%s2460_s1 + $0x538] sm:$0xff] }
  0x8f   :  { %825 = vmatpush.msra.mxu1 %v93_v45  ;;  %857 = vmatpush.msra.mxu2 %v173_v51  ;;  %v151_v41 = vld [vmem:[%s2460_s1 + $0x428] sm:$0xff]  ;;  %v229_v43 = vld [vmem:[%s2460_s1 + $0x698] sm:$0xff] }
  0x90   :  { %876 = vmatpush.msra.mxu3 %v207_v52  ;;  %838 = vmatpush.msra.mxu0 %v139_v54  ;;  %v117_v44 = vld [vmem:[%s2460_s1 + $0x318] sm:$0xff]  ;;  %v183_v46 = vld [vmem:[%s2460_s1 + $0x528] sm:$0xff] }
  0x91   :  { %826 = vmatpush.msra.mxu1 %v91_v53  ;;  %858 = vmatpush.msra.mxu2 %v171_v55  ;;  %v149_v45 = vld [vmem:[%s2460_s1 + $0x418] sm:$0xff]  ;;  %v227_v51 = vld [vmem:[%s2460_s1 + $0x688] sm:$0xff] }
  0x92   :  { %877 = vmatpush.msra.mxu3 %v205_v56  ;;  %839 = vmatpush.msra.mxu0 %v137_v58  ;;  %v115_v52 = vld [vmem:[%s2460_s1 + $0x308] sm:$0xff]  ;;  %v181_v54 = vld [vmem:[%s2460_s1 + $0x518] sm:$0xff] }
  0x93   :  { %827 = vmatpush.msra.mxu1 %v89_v57  ;;  %859 = vmatpush.msra.mxu2 %v169_v59  ;;  %v147_v53 = vld [vmem:[%s2460_s1 + $0x408] sm:$0xff]  ;;  %v225_v55 = vld [vmem:[%s2460_s1 + $0x678] sm:$0xff] }
  0x94   :  { %878 = vmatpush.msra.mxu3 %v203_v60  ;;  %840 = vmatpush.msra.mxu0 %v135_v62  ;;  %v273_v56 = vld [vmem:[%s2460_s1 + $0x7f8] sm:$0xff]  ;;  %v179_v58 = vld [vmem:[%s2460_s1 + $0x508] sm:$0xff] }
  0x95   :  { %828 = vmatpush.msra.mxu1 %v87_v61  ;;  %860 = vmatpush.msra.mxu2 %v167_v3  ;;  %v305_v57 = vld [vmem:[%s2460_s1 + $0x8f8] sm:$0xff]  ;;  %v223_v59 = vld [vmem:[%s2460_s1 + $0x668] sm:$0xff] }
  0x96   :  { %879 = vmatpush.msra.mxu3 %v201_v4  ;;  %841 = vmatpush.msra.mxu0 %v133_v6  ;;  %v271_v60 = vld [vmem:[%s2460_s1 + $0x7e8] sm:$0xff]  ;;  %v337_v62 = vld [vmem:[%s2460_s1 + $0x9f8] sm:$0xff] }
  0x97   :  { %829 = vmatpush.msra.mxu1 %v85_v5  ;;  %861 = vmatpush.msra.mxu2 %v165_v7  ;;  %v303_v61 = vld [vmem:[%s2460_s1 + $0x8e8] sm:$0xff]  ;;  %v269_v3 = vld [vmem:[%s2460_s1 + $0x7d8] sm:$0xff] }
  0x98   :  { %880 = vmatpush.msra.mxu3 %v199_v8  ;;  %842 = vmatpush.msra.mxu0 %v131_v10  ;;  %v301_v4 = vld [vmem:[%s2460_s1 + $0x8d8] sm:$0xff]  ;;  %v335_v5 = vld [vmem:[%s2460_s1 + $0x9e8] sm:$0xff] }
  0x99   :  { %830 = vmatpush.msra.mxu1 %v83_v9  ;;  %862 = vmatpush.msra.mxu2 %v163_v11  ;;  %v219_v6 = vld [vmem:[%s2460_s1 + $0x648] sm:$0xff]  ;;  %v333_v8 = vld [vmem:[%s2460_s1 + $0x9d8] sm:$0xff] }
  0x9a   :  { %881 = vmatpush.msra.mxu3 %v197_v12  ;;  %843 = vmatpush.msra.mxu0 %v129_v14  ;;  %v267_v7 = vld [vmem:[%s2460_s1 + $0x7c8] sm:$0xff]  ;;  %v217_v9 = vld [vmem:[%s2460_s1 + $0x638] sm:$0xff] }
  0x9b   :  { %895 = vmatpush.msrb.mxu1 %v241_v13  ;;  %863 = vmatpush.msra.mxu2 %v161_v15  ;;  %v265_v10 = vld [vmem:[%s2460_s1 + $0x7b8] sm:$0xff]  ;;  %v331_v12 = vld [vmem:[%s2460_s1 + $0x9c8] sm:$0xff] }
  0x9c   :  { %882 = vmatpush.msra.mxu3 %v195_v16  ;;  %844 = vmatpush.msra.mxu0 %v127_v18  ;;  %v297_v11 = vld [vmem:[%s2460_s1 + $0x8b8] sm:$0xff]  ;;  %v215_v13 = vld [vmem:[%s2460_s1 + $0x628] sm:$0xff] }
  0x9d   :  { %896 = vmatpush.msrb.mxu1 %v239_v17  ;;  %864 = vmatpush.msra.mxu2 %v159_v21  ;;  %v263_v14 = vld [vmem:[%s2460_s1 + $0x7a8] sm:$0xff]  ;;  %v213_v16 = vld [vmem:[%s2460_s1 + $0x618] sm:$0xff] }
  0x9e   :  { %883 = vmatpush.msra.mxu3 %v193_v22  ;;  %845 = vmatpush.msra.mxu0 %v125_v24  ;;  %v295_v15 = vld [vmem:[%s2460_s1 + $0x8a8] sm:$0xff]  ;;  %v261_v17 = vld [vmem:[%s2460_s1 + $0x798] sm:$0xff] }
  0x9f   :  { %897 = vmatpush.msrb.mxu1 %v237_v23  ;;  %865 = vmatpush.msra.mxu2 %v157_v27  ;;  %v327_v18 = vld [vmem:[%s2460_s1 + $0x9a8] sm:$0xff]  ;;  %v325_v23 = vld [vmem:[%s2460_s1 + $0x998] sm:$0xff] }
  0xa0   :  { %884 = vmatpush.msra.mxu3 %v191_v28  ;;  %846 = vmatpush.msra.mxu0 %v123_v30  ;;  %v259_v21 = vld [vmem:[%s2460_s1 + $0x788] sm:$0xff]  ;;  %v257_v24 = vld [vmem:[%s2460_s1 + $0x778] sm:$0xff] }
  0xa1   :  { %898 = vmatpush.msrb.mxu1 %v235_v29  ;;  %866 = vmatpush.msra.mxu2 %v155_v31  ;;  %v291_v22 = vld [vmem:[%s2460_s1 + $0x888] sm:$0xff]  ;;  %v289_v27 = vld [vmem:[%s2460_s1 + $0x878] sm:$0xff] }
  0xa2   :  { %885 = vmatpush.msra.mxu3 %v189_v32  ;;  %847 = vmatpush.msra.mxu0 %v121_v34  ;;  %v323_v28 = vld [vmem:[%s2460_s1 + $0x988] sm:$0xff]  ;;  %v321_v32 = vld [vmem:[%s2460_s1 + $0x978] sm:$0xff] }
  0xa3   :  { %899 = vmatpush.msrb.mxu1 %v233_v33  ;;  %867 = vmatpush.msra.mxu2 %v153_v36  ;;  %v367_v29 = vld [vmem:[%s2460_s1 + $0xae8] sm:$0xff]  ;;  %v365_v33 = vld [vmem:[%s2460_s1 + $0xad8] sm:$0xff] }
  0xa4   :  { %886 = vmatpush.msra.mxu3 %v187_v37  ;;  %848 = vmatpush.msra.mxu0 %v119_v39  ;;  %v255_v30 = vld [vmem:[%s2460_s1 + $0x768] sm:$0xff]  ;;  %v253_v34 = vld [vmem:[%s2460_s1 + $0x758] sm:$0xff] }
  0xa5   :  { %900 = vmatpush.msrb.mxu1 %v231_v38  ;;  %868 = vmatpush.msra.mxu2 %v151_v41  ;;  %v287_v31 = vld [vmem:[%s2460_s1 + $0x868] sm:$0xff]  ;;  %v285_v36 = vld [vmem:[%s2460_s1 + $0x858] sm:$0xff] }
  0xa6   :  { %887 = vmatpush.msra.mxu3 %v185_v42  ;;  %849 = vmatpush.msra.mxu0 %v117_v44  ;;  %v319_v37 = vld [vmem:[%s2460_s1 + $0x968] sm:$0xff]  ;;  %v361_v42 = vld [vmem:[%s2460_s1 + $0xab8] sm:$0xff] }
  0xa7   :  { %901 = vmatpush.msrb.mxu1 %v229_v43  ;;  %869 = vmatpush.msra.mxu2 %v149_v45  ;;  %v363_v38 = vld [vmem:[%s2460_s1 + $0xac8] sm:$0xff]  ;;  %v249_v43 = vld [vmem:[%s2460_s1 + $0x738] sm:$0xff] }
  0xa8   :  { %888 = vmatpush.msra.mxu3 %v183_v46  ;;  %850 = vmatpush.msra.mxu0 %v115_v52  ;;  %v251_v39 = vld [vmem:[%s2460_s1 + $0x748] sm:$0xff]  ;;  %v281_v44 = vld [vmem:[%s2460_s1 + $0x838] sm:$0xff] }
  0xa9   :  { %902 = vmatpush.msrb.mxu1 %v227_v51  ;;  %870 = vmatpush.msra.mxu2 %v147_v53  ;;  %v283_v41 = vld [vmem:[%s2460_s1 + $0x848] sm:$0xff]  ;;  %v313_v53 = vld [vmem:[%s2460_s1 + $0x938] sm:$0xff] }
  0xaa   :  { %889 = vmatpush.msra.mxu3 %v181_v54  ;;  %791 = vmatmul.f32.vlgmr.msrb.gmra.mxu2 %v1421_v47  ;;  %v221_v47 = vld [vmem:[%s2460_s1 + $0x658] sm:$0xff]  ;;  %v315_v45 = vld [vmem:[%s2460_s1 + $0x948] sm:$0xff] }
  0xab   :  { %903 = vmatpush.msrb.mxu1 %v225_v55  ;;  %915 = vmatpush.msrb.mxu0 %v273_v56  ;;  %v359_v46 = vld [vmem:[%s2460_s1 + $0xaa8] sm:$0xff]  ;;  %v357_v54 = vld [vmem:[%s2460_s1 + $0xa98] sm:$0xff] }
  0xac   :  { %935 = vmatpush.msrb.mxu2 %v305_v57  ;;  %890 = vmatpush.msra.mxu3 %v179_v58  ;;  %v247_v51 = vld [vmem:[%s2460_s1 + $0x728] sm:$0xff]  ;;  %v245_v55 = vld [vmem:[%s2460_s1 + $0x718] sm:$0xff] }
  0xad   :  { %904 = vmatpush.msrb.mxu1 %v223_v59  ;;  %811 = vmatmul.f32.vlgmr.msrb.gmra.mxu3 %v1423_v48  ;;  %v299_v48 = vld [vmem:[%s2460_s1 + $0x8c8] sm:$0xff]  ;;  %v277_v56 = vld [vmem:[%s2460_s1 + $0x818] sm:$0xff] }
  0xae   :  { %916 = vmatpush.msrb.mxu0 %v271_v60  ;;  %936 = vmatpush.msrb.mxu2 %v303_v61  ;;  %v279_v52 = vld [vmem:[%s2460_s1 + $0x828] sm:$0xff]  ;;  %v309_v61 = vld [vmem:[%s2460_s1 + $0x918] sm:$0xff] }
  0xaf   :  { %955 = vmatpush.msrb.mxu3 %v337_v62  ;;  %905 = vmatpush.msrb.mxu1 %v221_v47  ;;  %v311_v57 = vld [vmem:[%s2460_s1 + $0x928] sm:$0xff]  ;;  %v353_v62 = vld [vmem:[%s2460_s1 + $0xa78] sm:$0xff] }
  0xb0   :  { %917 = vmatpush.msrb.mxu0 %v269_v3  ;;  %937 = vmatpush.msrb.mxu2 %v301_v4  ;;  %v355_v58 = vld [vmem:[%s2460_s1 + $0xa88] sm:$0xff]  ;;  %v401_v47 = vld [vmem:[%s2460_s1 + $0xbf8] sm:$0xff] }
  0xb1   :  { %956 = vmatpush.msrb.mxu3 %v335_v5  ;;  %906 = vmatpush.msrb.mxu1 %v219_v6  ;;  %v243_v59 = vld [vmem:[%s2460_s1 + $0x708] sm:$0xff]  ;;  %v433_v3 = vld [vmem:[%s2460_s1 + $0xcf8] sm:$0xff] }
  0xb2   :  { %918 = vmatpush.msrb.mxu0 %v267_v7  ;;  %938 = vmatpush.msrb.mxu2 %v299_v48  ;;  %v275_v60 = vld [vmem:[%s2460_s1 + $0x808] sm:$0xff]  ;;  %v349_v7 = vld [vmem:[%s2460_s1 + $0xa58] sm:$0xff] }
  0xb3   :  { %957 = vmatpush.msrb.mxu3 %v333_v8  ;;  %871 = vmatmul.f32.vlgmr.msra.gmra.mxu2 %v1467_v0  ;;  %v329_v0 = vld [vmem:[%s2460_s1 + $0x9b8] sm:$0xff]  ;;  %v307_v4 = vld [vmem:[%s2460_s1 + $0x908] sm:$0xff] }
  0xb4   :  { %907 = vmatpush.msrb.mxu1 %v217_v9  ;;  %919 = vmatpush.msrb.mxu0 %v265_v10  ;;  %v351_v5 = vld [vmem:[%s2460_s1 + $0xa68] sm:$0xff]  ;;  %v449_v48 = vld [vmem:[%s2460_s1 + $0xd78] sm:$0xff] }
  0xb5   :  { %939 = vmatpush.msrb.mxu2 %v297_v11  ;;  %958 = vmatpush.msrb.mxu3 %v331_v12  ;;  %v399_v6 = vld [vmem:[%s2460_s1 + $0xbe8] sm:$0xff]  ;;  %v429_v8 = vld [vmem:[%s2460_s1 + $0xcd8] sm:$0xff] }
  0xb6   :  { %831 = vmatmul.f32.vlgmr.msra.gmra.mxu1 %v1425_v49  ;;  %891 = vmatmul.f32.vlgmr.msra.gmra.mxu3 %v1471_v2  ;;  %v293_v49 = vld [vmem:[%s2460_s1 + $0x898] sm:$0xff]  ;;  %v211_v2 = vld [vmem:[%s2460_s1 + $0x608] sm:$0xff] }
  0xb7   :  { %908 = vmatpush.msrb.mxu1 %v215_v13  ;;  %920 = vmatpush.msrb.mxu0 %v263_v14  ;;  %v347_v9 = vld [vmem:[%s2460_s1 + $0xa48] sm:$0xff]  ;;  %v345_v12 = vld [vmem:[%s2460_s1 + $0xa38] sm:$0xff] }
  0xb8   :  { %940 = vmatpush.msrb.mxu2 %v295_v15  ;;  %959 = vmatpush.msrb.mxu3 %v329_v0  ;;  %v395_v10 = vld [vmem:[%s2460_s1 + $0xbc8] sm:$0xff]  ;;  %v393_v13 = vld [vmem:[%s2460_s1 + $0xbb8] sm:$0xff] }
  0xb9   :  { %851 = vmatmul.f32.vlgmr.msra.gmra.mxu0 %v1427_v50  ;;  %909 = vmatpush.msrb.mxu1 %v213_v16  ;;  %v369_v50 = vld [vmem:[%s2460_s1 + $0xaf8] sm:$0xff]  ;;  %v447_v11 = vld [vmem:[%s2460_s1 + $0xd68] sm:$0xff] }
  0xba   :  { %921 = vmatpush.msrb.mxu0 %v261_v17  ;;  %941 = vmatpush.msrb.mxu2 %v293_v49  ;;  %v445_v14 = vld [vmem:[%s2460_s1 + $0xd58] sm:$0xff]  ;;  %v343_v0 = vld [vmem:[%s2460_s1 + $0xa28] sm:$0xff] }
  0xbb   :  { %960 = vmatpush.msrb.mxu3 %v327_v18  ;;  %910 = vmatpush.msrb.mxu1 %v211_v2  ;;  %v425_v15 = vld [vmem:[%s2460_s1 + $0xcb8] sm:$0xff]  ;;  %v391_v16 = vld [vmem:[%s2460_s1 + $0xba8] sm:$0xff] }
  0xbc   :  { %922 = vmatpush.msrb.mxu0 %v259_v21  ;;  %942 = vmatpush.msrb.mxu2 %v291_v22  ;;  %v443_v17 = vld [vmem:[%s2460_s1 + $0xd48] sm:$0xff]  ;;  %v341_v18 = vld [vmem:[%s2460_s1 + $0xa18] sm:$0xff] }
  0xbd   :  { %961 = vmatpush.msrb.mxu3 %v325_v23  ;;  %975 = vmatpush.msra.mxu1 %v369_v50  ;;  %v423_v49 = vld [vmem:[%s2460_s1 + $0xca8] sm:$0xff]  ;;  %v389_v2 = vld [vmem:[%s2460_s1 + $0xb98] sm:$0xff] }
  0xbe   :  { %923 = vmatpush.msrb.mxu0 %v257_v24  ;;  %943 = vmatpush.msrb.mxu2 %v289_v27  ;;  %v441_v21 = vld [vmem:[%s2460_s1 + $0xd38] sm:$0xff]  ;;  %v339_v23 = vld [vmem:[%s2460_s1 + $0xa08] sm:$0xff] }
  0xbf   :  { %962 = vmatpush.msrb.mxu3 %v323_v28  ;;  %976 = vmatpush.msra.mxu1 %v367_v29  ;;  %v421_v22 = vld [vmem:[%s2460_s1 + $0xc98] sm:$0xff]  ;;  %v387_v50 = vld [vmem:[%s2460_s1 + $0xb88] sm:$0xff] }
  0xc0   :  { %924 = vmatpush.msrb.mxu0 %v255_v30  ;;  %911 = vmatmul.f32.vlgmr.msrb.gmra.mxu1 %v1465_v63  ;;  %v317_v63 = vld [vmem:[%s2460_s1 + $0x958] sm:$0xff]  ;;  %v419_v24 = vld [vmem:[%s2460_s1 + $0xc88] sm:$0xff] }
  0xc1   :  { %944 = vmatpush.msrb.mxu2 %v287_v31  ;;  %963 = vmatpush.msrb.mxu3 %v321_v32  ;;  %v439_v27 = vld [vmem:[%s2460_s1 + $0xd28] sm:$0xff]  ;;  %v385_v28 = vld [vmem:[%s2460_s1 + $0xb78] sm:$0xff] }
  0xc2   :  { %977 = vmatpush.msra.mxu1 %v365_v33  ;;  %925 = vmatpush.msrb.mxu0 %v253_v34  ;;  %v417_v29 = vld [vmem:[%s2460_s1 + $0xc78] sm:$0xff]  ;;  %v383_v31 = vld [vmem:[%s2460_s1 + $0xb68] sm:$0xff] }
  0xc3   :  { %945 = vmatpush.msrb.mxu2 %v285_v36  ;;  %964 = vmatpush.msrb.mxu3 %v319_v37  ;;  %v437_v30 = vld [vmem:[%s2460_s1 + $0xd18] sm:$0xff]  ;;  %v415_v32 = vld [vmem:[%s2460_s1 + $0xc68] sm:$0xff] }
  0xc4   :  { %978 = vmatpush.msra.mxu1 %v363_v38  ;;  %926 = vmatpush.msrb.mxu0 %v251_v39  ;;  %v381_v33 = vld [vmem:[%s2460_s1 + $0xb58] sm:$0xff]  ;;  %v379_v36 = vld [vmem:[%s2460_s1 + $0xb48] sm:$0xff] }
  0xc5   :  { %946 = vmatpush.msrb.mxu2 %v283_v41  ;;  %965 = vmatpush.msrb.mxu3 %v317_v63  ;;  %v413_v34 = vld [vmem:[%s2460_s1 + $0xc58] sm:$0xff]  ;;  %v411_v37 = vld [vmem:[%s2460_s1 + $0xc48] sm:$0xff] }
  0xc6   :  { %979 = vmatpush.msra.mxu1 %v361_v42  ;;  %927 = vmatpush.msrb.mxu0 %v249_v43  ;;  %v377_v38 = vld [vmem:[%s2460_s1 + $0xb38] sm:$0xff]  ;;  %v375_v41 = vld [vmem:[%s2460_s1 + $0xb28] sm:$0xff] }
  0xc7   :  { %947 = vmatpush.msrb.mxu2 %v281_v44  ;;  %966 = vmatpush.msrb.mxu3 %v315_v45  ;;  %v409_v39 = vld [vmem:[%s2460_s1 + $0xc38] sm:$0xff]  ;;  %v371_v43 = vld [vmem:[%s2460_s1 + $0xb08] sm:$0xff]  ;;  %v532_v45 = vpop.f32.mrf.mxu1 }
  0xc8   :  { %980 = vmatpush.msra.mxu1 %v359_v46  ;;  %928 = vmatpush.msrb.mxu0 %v247_v51  ;;  %v373_v63 = vld [vmem:[%s2460_s1 + $0xb18] sm:$0xff]  ;;  %v403_v44 = vld [vmem:[%s2460_s1 + $0xc08] sm:$0xff]  ;;  %v552_v46 = vpop.f32.mrf.mxu2  ;;  %v512_v51 = vpop.f32.mrf.mxu0 }
  0xc9   :  { %948 = vmatpush.msrb.mxu2 %v279_v52  ;;  %967 = vmatpush.msrb.mxu3 %v313_v53  ;;  %v405_v42 = vld [vmem:[%s2460_s1 + $0xc18] sm:$0xff]  ;;  %v572_v52 = vpop.f32.mrf.mxu3 }
  0xca   :  { %981 = vmatpush.msra.mxu1 %v357_v54  ;;  %929 = vmatpush.msrb.mxu0 %v245_v55 }
  0xcb   :  { %949 = vmatpush.msrb.mxu2 %v277_v56  ;;  %968 = vmatpush.msrb.mxu3 %v311_v57  ;;  %v450_v57 = vld [vmem:[%s2462_s2] sm:$0x3] }
  0xcc   :  { %982 = vmatpush.msra.mxu1 %v355_v58  ;;  %930 = vmatpush.msrb.mxu0 %v243_v59 }
  0xcd   :  { %950 = vmatpush.msrb.mxu2 %v275_v60  ;;  %969 = vmatpush.msrb.mxu3 %v309_v61  ;;  %v452_v60 = vperm.slane %v450_v57, 0 }
  0xce   :  { %931 = vmatmul.f32.vlgmr.msrb.gmra.mxu0 %v1469_v1  ;;  %951 = vmatmul.f32.vlgmr.msrb.gmra.mxu2 %v1697_v19  ;;  %v431_v1 = vld [vmem:[%s2460_s1 + $0xce8] sm:$0xff]  ;;  %v397_v19 = vld [vmem:[%s2460_s1 + $0xbd8] sm:$0xff] }
  0xcf   :  { %983 = vmatpush.msra.mxu1 %v353_v62  ;;  %995 = vmatpush.msra.mxu0 %v401_v47  ;;  %v453_v47 = vperm.slane %v450_v57, 1 }
  0xd0   :  { %1015 = vmatpush.msra.mxu2 %v433_v3  ;;  %970 = vmatpush.msrb.mxu3 %v307_v4  ;;  %v612_v53 = vpop.f32.mrf.mxu1  ;;  %v592_v55 = vpop.f32.mrf.mxu0 }
  0xd1   :  { %984 = vmatpush.msra.mxu1 %v351_v5  ;;  %971 = vmatmul.f32.vlgmr.msrb.gmra.mxu3 %v1715_v25  ;;  %v427_v25 = vld [vmem:[%s2460_s1 + $0xcc8] sm:$0xff]  ;;  %v632_v54 = vpop.f32.mrf.mxu2 }
  0xd2   :  { %996 = vmatpush.msra.mxu0 %v399_v6  ;;  %1016 = vmatpush.msra.mxu2 %v431_v1 }
  0xd3   :  { %985 = vmatpush.msra.mxu1 %v349_v7  ;;  %1043 = vmatpush.msra.mxu3 %v449_v48  ;;  %v652_v56 = vpop.f32.mrf.mxu3 }
  0xd4   :  { %997 = vmatpush.msra.mxu0 %v397_v19  ;;  %1017 = vmatpush.msra.mxu2 %v429_v8 }
  0xd5   :  { %986 = vmatpush.msra.mxu1 %v347_v9  ;;  %1044 = vmatpush.msra.mxu3 %v447_v11 }
  0xd6   :  { %998 = vmatpush.msra.mxu0 %v395_v10  ;;  %1018 = vmatpush.msra.mxu2 %v427_v25 }
  0xd7   :  { %987 = vmatpush.msra.mxu1 %v345_v12  ;;  %1045 = vmatpush.msra.mxu3 %v445_v14 }
  0xd8   :  { %999 = vmatpush.msra.mxu0 %v393_v13  ;;  %1019 = vmatpush.msra.mxu2 %v425_v15 }
  0xd9   :  { %988 = vmatpush.msra.mxu1 %v343_v0  ;;  %1046 = vmatpush.msra.mxu3 %v443_v17 }
  0xda   :  { %1000 = vmatpush.msra.mxu0 %v391_v16  ;;  %1020 = vmatpush.msra.mxu2 %v423_v49 }
  0xdb   :  { %989 = vmatpush.msra.mxu1 %v341_v18  ;;  %1047 = vmatpush.msra.mxu3 %v441_v21 }
  0xdc   :  { %1001 = vmatpush.msra.mxu0 %v389_v2  ;;  %1021 = vmatpush.msra.mxu2 %v421_v22 }
  0xdd   :  { %990 = vmatpush.msra.mxu1 %v339_v23  ;;  %1048 = vmatpush.msra.mxu3 %v439_v27 }
  0xde   :  { %1002 = vmatpush.msra.mxu0 %v387_v50  ;;  %991 = vmatmul.f32.vlgmr.msra.gmra.mxu1 %v1699_v20  ;;  %v435_v20 = vld [vmem:[%s2460_s1 + $0xd08] sm:$0xff] }
  0xdf   :  { %1022 = vmatpush.msra.mxu2 %v419_v24  ;;  %1049 = vmatpush.msra.mxu3 %v437_v30 }
  0xe0   :  { %1003 = vmatpush.msra.mxu0 %v385_v28 }
  0xe1   :  { %1023 = vmatpush.msra.mxu2 %v417_v29  ;;  %1050 = vmatpush.msra.mxu3 %v435_v20 }
  0xe2   :  { %1004 = vmatpush.msra.mxu0 %v383_v31  ;;  %1067 = vmatmul.msk.f32.vlgmr.msra.gmra.mxu3 %vm492_vm0, %v1915_v40  ;;  %v407_v40 = vld [vmem:[%s2460_s1 + $0xc28] sm:$0xff] }
  0xe3   :  { %1024 = vmatpush.msra.mxu2 %v415_v32 }
  0xe4   :  { %1005 = vmatpush.msra.mxu0 %v381_v33  ;;  %v672_v61 = vpop.f32.mrf.mxu0 }
  0xe5   :  { %1025 = vmatpush.msra.mxu2 %v413_v34 }
  0xe6   :  { %1006 = vmatpush.msra.mxu0 %v379_v36 }
  0xe7   :  { %1026 = vmatpush.msra.mxu2 %v411_v37  ;;  %v692_v58 = vpop.f32.mrf.mxu1 }
  0xe8   :  { %1007 = vmatpush.msra.mxu0 %v377_v38 }
  0xe9   :  { %1027 = vmatpush.msra.mxu2 %v409_v39 }
  0xea   :  { %1008 = vmatpush.msra.mxu0 %v375_v41 }
  0xeb   :  { %1028 = vmatpush.msra.mxu2 %v407_v40  ;;  %v712_v59 = vpop.f32.mrf.mxu2 }
  0xec   :  { %1009 = vmatpush.msra.mxu0 %v373_v63 }
  0xed   :  { %1029 = vmatpush.msra.mxu2 %v405_v42 }
  0xee   :  { %1010 = vmatpush.msra.mxu0 %v371_v43  ;;  %v732_v62 = vpop.f32.mrf.mxu3 }
  0xef   :  { %1030 = vmatpush.msra.mxu2 %v403_v44  ;;  %1011 = vmatmul.f32.vlgmr.msra.gmra.mxu0 %v1717_v26  ;;  %v513_v26 = vadd.f32 %v512_v51, %v452_v60 }
  0xf0   :  { %1031 = vmatmul.f32.vlgmr.msra.gmra.mxu2 %v1901_v35 }
  0xf1   :  { %v533_v4 = vadd.f32 %v532_v45, %v513_v26 }
  0xf3   :  { %v553_v7 = vadd.f32 %v552_v46, %v533_v4 }
  0xf5   :  { %v573_v8 = vadd.f32 %v572_v52, %v553_v7 }
  0xf7   :  { %v593_v11 = vadd.f32 %v592_v55, %v573_v8 }
  0xf9   :  { %v613_v13 = vadd.f32 %v612_v53, %v593_v11 }
  0xfb   :  { %v633_v0 = vadd.f32 %v632_v54, %v613_v13 }
  0xfd   :  { %v653_v18 = vadd.f32 %v652_v56, %v633_v0 }
  0xff   :  { %v673_v22 = vadd.f32 %v672_v61, %v653_v18 }
 0x101   :  { %v693_v27 = vadd.f32 %v692_v58, %v673_v22 }
 0x103   :  { %v713_v29 = vadd.f32 %v712_v59, %v693_v27 }
 0x105   :  { %v733_v20 = vadd.f32 %v732_v62, %v713_v29 }
 0x106   :  { %v752_v6 = vpop.f32.mrf.mxu0 }
 0x107   :  { %v753_v37 = vadd.f32 %v752_v6, %v733_v20 }
 0x109   :  { %v772_v35 = vpop.f32.mrf.mxu1 }
 0x10a   :  { %v773_v41 = vadd.f32 %v772_v35, %v753_v37 }
 0x12d   :  { %v792_v3 = vpop.f32.mrf.mxu2 }
 0x12e   :  { %v793_v5 = vadd.f32 %v792_v3, %v453_v47 }
 0x130   :  { %v812_v1 = vpop.f32.mrf.mxu3 }
 0x131   :  { %v813_v19 = vadd.f32 %v812_v1, %v793_v5 }
 0x133   :  { %v832_v48 = vpop.f32.mrf.mxu1 }
 0x134   :  { %v833_v9 = vadd.f32 %v832_v48, %v813_v19 }
 0x136   :  { %v852_v10 = vpop.f32.mrf.mxu0  ;;  %v872_v12 = vpop.f32.mrf.mxu2 }
 0x137   :  { %v853_v25 = vadd.f32 %v852_v10, %v833_v9 }
 0x139   :  { %v873_v14 = vadd.f32 %v872_v12, %v853_v25  ;;  %v892_v15 = vpop.f32.mrf.mxu3 }
 0x13b   :  { %v893_v16 = vadd.f32 %v892_v15, %v873_v14 }
 0x13d   :  { %v912_v17 = vpop.f32.mrf.mxu1 }
 0x13e   :  { %v913_v2 = vadd.f32 %v912_v17, %v893_v16 }
 0x14b   :  { %v932_v49 = vpop.f32.mrf.mxu0 }
 0x14c   :  { %v933_v23 = vadd.f32 %v932_v49, %v913_v2 }
 0x151   :  { %v952_v21 = vpop.f32.mrf.mxu2 }
 0x152   :  { %v953_v50 = vadd.f32 %v952_v21, %v933_v23 }
 0x154   :  { %v972_v24 = vpop.f32.mrf.mxu3 }
 0x155   :  { %v973_v30 = vadd.f32 %v972_v24, %v953_v50 }
 0x15b   :  { %v992_v28 = vpop.f32.mrf.mxu1 }
 0x15c   :  { %v993_v32 = vadd.f32 %v992_v28, %v973_v30 }
 0x165   :  { %v1052_v36 = vpop.f32.mrf.mxu3 }
 0x16c   :  { %v1012_v31 = vpop.f32.mrf.mxu0 }
 0x16d   :  { %v1013_v33 = vadd.f32 %v1012_v31, %v993_v32 }
 0x173   :  { %v1032_v34 = vpop.f32.mrf.mxu2 }
 0x174   :  { %v1033_v38 = vadd.f32 %v1032_v34, %v1013_v33 }
 0x176   :  { %v1053_v39 = vadd.f32 %v1052_v36, %v1033_v38 }
 0x178   :  { %v1057_v40 = vrot.slane %v1053_v39, 6 }
 0x17a   :  { %v1059_v63 = vsel %vm1058_vm1, %v773_v41, %v1057_v40 }
 0x17b   :  { %1061 = vst [vmem:[%s2463_s3] sm:$0xf] %v1059_v63 }

</bundles_post_ra>
